<compile_context>
chip_gen: v7x
topology: tpu7x:2x2x1
jax: 0.10.0
libtpu: 0.0.40
codegen_flags: <defaults>
</compile_context>

<pallas_src>
import jax
import jax.numpy as jnp
from jax import lax
from jax.experimental import pallas as pl
from jax.experimental.pallas import tpu as pltpu

# ----------------------------- small config ---------------------------------
B = 2                         # batch
C = 3                         # input channels (NCHW, like PyTorch)
IMG = 16                      # image H = W
PATCH = 8                     # patch size
N_PATCH = (IMG // PATCH) ** 2 # 4 patches
T = N_PATCH + 1               # tokens = patches + [CLS] = 5
BT = B * T                    # stacked batch*token rows = 10
PD = C * PATCH * PATCH        # flattened patch dim = 192
D = 32                        # transformer hidden (== model.head.in_features)
H = 2                         # attention heads
DH = D // H                   # head dim = 16
L = 2                         # depth
DM = 4 * D                    # MLP hidden = 128
E = 16                        # embedding_size
QKV = 3 * H * DH              # fused qkv width = 96
LN_EPS = 1e-6                 # timm DeiT LayerNorm eps
BN_EPS = 1e-5                 # nn.BatchNorm1d eps
NEG = -1e9                    # additive mask value (cross-batch attention)

# ----------------- packed-parameter buffer layouts (static) ------------------
# All slab starts are multiples of 8 (sublane-aligned).
# p32: lane width D = 32
OFF_ADD = 0                       # (BT, D)  cls/pos/patch-embed-bias additive term
OFF_MASK = 16                     # (BT, D)  block-diag attn mask (first BT lanes valid)
OFF_SEL = 32                      # (B, D)   CLS-row selection matrix (first BT lanes valid)
OFF_PE = 40                       # (PD, D)  patch-embed weight (pre-transposed)
OFF_LAYERS = OFF_PE + PD          # 232, per-layer blocks start here (multiple of 8)
L32_PROJW = 0                     # (D, D)   attn out-proj weight (pre-transposed)
L32_PROJB = 32                    # (1, D)
L32_FC2W = 40                     # (DM, D)  mlp fc2 weight (pre-transposed)
L32_FC2B = L32_FC2W + DM          # 168
L32_SIZE = 176                    # multiple of 8
P32_ROWS = OFF_LAYERS + L * L32_SIZE

# p96: lane width QKV = 96 ; per layer: w_qkvT (D rows, ln1+scale folded) + b_qkv (1 row) + pad
QKV_STRIDE = 40
P96_ROWS = L * QKV_STRIDE

# p128: lane width DM = 128 ; per layer: w_fc1T (D rows, ln2 folded) + b_fc1 (1 row) + pad
FC1_STRIDE = 40
P128_ROWS = L * FC1_STRIDE

# p16: lane width E = 16 ; w_headT (D rows, lnf folded) + bn_g + bn_b  (b_head dropped: cancels in BN)
P16_ROWS = D + 2


def _layer_norm(x):
    # affine (gamma/beta) folded into the next matmul at pack time
    mu = jnp.mean(x, axis=-1, keepdims=True)
    var = jnp.mean((x - mu) ** 2, axis=-1, keepdims=True)
    return (x - mu) * lax.rsqrt(var + LN_EPS)


def _gelu(x):
    # TODO(synk): nn.GELU uses the exact erf form; tanh approximation used here
    # to avoid relying on an erf lowering in Mosaic (difference ~1e-3).
    c = jnp.float32(0.7978845608028654)  # sqrt(2/pi)
    return 0.5 * x * (1.0 + jnp.tanh(c * (x + 0.044715 * x * x * x)))


def deit_kernel(patches_ref, p32_ref, p96_ref, p128_ref, p16_ref, out_ref):
    add_tok = p32_ref[OFF_ADD:OFF_ADD + BT, :]            # (BT, D)
    mask = p32_ref[OFF_MASK:OFF_MASK + BT, :][:, :BT]     # (BT, BT) block-diagonal
    sel = p32_ref[OFF_SEL:OFF_SEL + B, :][:, :BT]         # (B, BT)  CLS-row selector
    w_peT = p32_ref[OFF_PE:OFF_PE + PD, :]                # (PD, D)

    # ---- patch embedding (conv k=P, s=P as matmul); cls rows of `patches` are
    # zero, so their embedding comes entirely from add_tok (cls token + pos) ----
    tokens = jnp.dot(patches_ref[...], w_peT,
                     preferred_element_type=jnp.float32) + add_tok   # (BT, D)

    # ---- transformer blocks ----
    for l in range(L):
        b32 = OFF_LAYERS + l * L32_SIZE
        b_proj = p32_ref[b32 + L32_PROJB:b32 + L32_PROJB + 1, :]
        w_fc2T = p32_ref[b32 + L32_FC2W:b32 + L32_FC2W + DM, :]
        b_fc2 = p32_ref[b32 + L32_FC2B:b32 + L32_FC2B + 1, :]

        bq = l * QKV_STRIDE
        w_qkvT = p96_ref[bq:bq + D, :]                    # (D, 3*H*DH), ln1 + q-scale folded
        b_qkv = p96_ref[bq + D:bq + D + 1, :]             # (1, 3*H*DH)

        bf = l * FC1_STRIDE
        w_fc1T = p128_ref[bf:bf + D, :]                   # (D, DM), ln2 folded
        b_fc1 = p128_ref[bf + D:bf + D + 1, :]            # (1, DM)

        # ---- attention (fused QKV; block-diag mask keeps batches separate;
        # out-proj done per head to avoid a lane-concatenate relayout) ----
        hdd = _layer_norm(tokens)                                            # (BT, D)
        qkv = jnp.dot(hdd, w_qkvT, preferred_element_type=jnp.float32) + b_qkv  # (BT, 96)

        acc = None
        for hh in range(H):
            q = qkv[:, (0 * H + hh) * DH:(0 * H + hh + 1) * DH]              # (BT, DH), pre-scaled
            k = qkv[:, (1 * H + hh) * DH:(1 * H + hh + 1) * DH]
            v = qkv[:, (2 * H + hh) * DH:(2 * H + hh + 1) * DH]
            s = lax.dot_general(q, k, (((1,), (1,)), ((), ())),
                                preferred_element_type=jnp.float32) + mask   # (BT, BT)
            s = s - jnp.max(s, axis=-1, keepdims=True)
            p = jnp.exp(s)
            p = p * pl.reciprocal(jnp.sum(p, axis=-1, keepdims=True), approx=True)
            hv = jnp.dot(p, v, preferred_element_type=jnp.float32)           # (BT, DH)
            w_proj_h = p32_ref[b32 + L32_PROJW + hh * DH:
                               b32 + L32_PROJW + (hh + 1) * DH, :]           # (DH, D), 8-aligned
            part = jnp.dot(hv, w_proj_h, preferred_element_type=jnp.float32) # (BT, D)
            acc = part if acc is None else acc + part
        tokens = tokens + acc + b_proj

        # ---- MLP (GELU runs on the full 128-lane (BT, DM) tile) ----
        m = _layer_norm(tokens)
        m = jnp.dot(m, w_fc1T, preferred_element_type=jnp.float32) + b_fc1
        m = _gelu(m)
        m = jnp.dot(m, w_fc2T, preferred_element_type=jnp.float32) + b_fc2
        tokens = tokens + m

    # ---- final norm (lnf affine folded into head weight), CLS selection matmul,
    # metric-learning head ----
    tokens = _layer_norm(tokens)
    cls_feat = jnp.dot(sel, tokens, preferred_element_type=jnp.float32)      # (B, D)

    w_headT = p16_ref[0:D, :]                                                # (D, E)
    bn_g = p16_ref[D:D + 1, :]
    bn_b = p16_ref[D + 1:D + 2, :]

    # b_head (and lnf_b @ w_headT) omitted: constant per-feature biases cancel
    # exactly under training-mode BatchNorm (mean subtraction).
    emb = jnp.dot(cls_feat, w_headT, preferred_element_type=jnp.float32)     # (B, E)

    # ---- BatchNorm1d over the batch (training-mode batch stats, biased var) ----
    mu = jnp.mean(emb, axis=0, keepdims=True)
    var = jnp.mean((emb - mu) ** 2, axis=0, keepdims=True)
    out_ref[...] = (emb - mu) * lax.rsqrt(var + BN_EPS) * bn_g + bn_b


# ------------------------------- JAX glue ------------------------------------
def extract_patches(x):
    """x: (B, C, IMG, IMG) NCHW -> (B*T, C*P*P) with a zero cls row at token 0
    of each batch item.  Feature order is (c, ph, pw), matching a Conv2d weight
    of shape (D, C, P, P) flattened to (D, C*P*P)."""
    xb = x.reshape(B, C, IMG // PATCH, PATCH, IMG // PATCH, PATCH)
    xb = xb.transpose(0, 2, 4, 1, 3, 5)            # (B, gh, gw, C, P, P)
    xb = xb.reshape(B, N_PATCH, PD)                # (B, N, PD), grid row-major
    zero_row = jnp.zeros((B, 1, PD), dtype=x.dtype)
    return jnp.concatenate([zero_row, xb], axis=1).reshape(BT, PD)


def init_params(key):
    def nrm(k, shape, scale=0.02):
        return scale * jax.random.normal(k, shape, dtype=jnp.float32)

    ks = jax.random.split(key, 10)
    params = dict(
        cls=nrm(ks[0], (1, D)),
        pos=nrm(ks[1], (T, D)),
        w_pe=nrm(ks[2], (D, PD)),            # Conv2d(C, D, P, P) flattened
        b_pe=jnp.zeros((1, D), jnp.float32),
        ln1_g=jnp.ones((L, 1, D), jnp.float32),
        ln1_b=jnp.zeros((L, 1, D), jnp.float32),
        w_qkv=nrm(ks[3], (L, QKV, D)),       # qkv Linear, rows ordered (q/k/v, head, dh)
        b_qkv=nrm(ks[4], (L, 1, QKV)),
        w_proj=nrm(ks[5], (L, D, D)),        # attn output projection
        b_proj=jnp.zeros((L, 1, D), jnp.float32),
        ln2_g=jnp.ones((L, 1, D), jnp.float32),
        ln2_b=jnp.zeros((L, 1, D), jnp.float32),
        w_fc1=nrm(ks[6], (L, DM, D)),
        b_fc1=jnp.zeros((L, 1, DM), jnp.float32),
        w_fc2=nrm(ks[7], (L, D, DM)),
        b_fc2=jnp.zeros((L, 1, D), jnp.float32),
        lnf_g=jnp.ones((1, D), jnp.float32),
        lnf_b=jnp.zeros((1, D), jnp.float32),
        w_head=nrm(ks[8], (E, D)),           # self.model.head = nn.Linear(num_ftrs, E)
        b_head=jnp.zeros((1, E), jnp.float32),  # dropped at pack time (cancels in BN)
        bn_g=jnp.ones((1, E), jnp.float32),  # BatchNorm1d default affine init
        bn_b=jnp.zeros((1, E), jnp.float32),
    )
    return params


def pack_params(p):
    """Host-side packing: pre-transpose weights, fold cls/pos/pe-bias into one
    additive tensor, fold LayerNorm affines and the attention scale into the
    adjacent matmuls, build the block-diagonal attention mask and the CLS
    selection matrix, and concatenate everything into 4 lane-width-grouped,
    sublane(8)-aligned buffers."""
    # additive token term: cls row gets cls + pos[0]; patch rows get pos[1:] + b_pe
    per_batch = jnp.concatenate([p['cls'] + p['pos'][0:1],
                                 p['pos'][1:] + p['b_pe']], axis=0)       # (T, D)
    add_tok = jnp.tile(per_batch, (B, 1))                                  # (BT, D)

    tok_batch = jnp.arange(BT) // T
    same = tok_batch[:, None] == tok_batch[None, :]
    mask = jnp.where(same, 0.0, NEG).astype(jnp.float32)                   # (BT, BT)
    mask_pad = jnp.pad(mask, ((0, 0), (0, D - BT)))                        # (BT, D)

    sel = jnp.zeros((B, BT), jnp.float32)
    sel = sel.at[jnp.arange(B), jnp.arange(B) * T].set(1.0)                # picks CLS rows
    sel_pad = jnp.pad(sel, ((0, 0), (0, D - BT)))                          # (B, D)

    w_peT = p['w_pe'].T                                                    # (PD, D)

    # ------ p32: lane width D ------
    p32 = jnp.zeros((P32_ROWS, D), jnp.float32)
    p32 = p32.at[OFF_ADD:OFF_ADD + BT].set(add_tok)
    p32 = p32.at[OFF_MASK:OFF_MASK + BT].set(mask_pad)
    p32 = p32.at[OFF_SEL:OFF_SEL + B].set(sel_pad)
    p32 = p32.at[OFF_PE:OFF_PE + PD].set(w_peT)
    for l in range(L):
        base = OFF_LAYERS + l * L32_SIZE
        p32 = p32.at[base + L32_PROJW:base + L32_PROJW + D].set(p['w_proj'][l].T)
        p32 = p32.at[base + L32_PROJB:base + L32_PROJB + 1].set(p['b_proj'][l])
        p32 = p32.at[base + L32_FC2W:base + L32_FC2W + DM].set(p['w_fc2'][l].T)
        p32 = p32.at[base + L32_FC2B:base + L32_FC2B + 1].set(p['b_fc2'][l])

    # ------ p96: fused qkv, ln1 affine + attention scale folded ------
    qscale = jnp.concatenate([jnp.full((1, H * DH), DH ** -0.5, jnp.float32),
                              jnp.ones((1, 2 * H * DH), jnp.float32)], axis=1)  # (1, QKV)
    p96 = jnp.zeros((P96_ROWS, QKV), jnp.float32)
    for l in range(L):
        base = l * QKV_STRIDE
        w_qkvT_l = p['w_qkv'][l].T                                         # (D, QKV)
        b_qkv_l = p['b_qkv'][l] + p['ln1_b'][l] @ w_qkvT_l                 # (1, QKV)
        w_qkvT_l = w_qkvT_l * p['ln1_g'][l].T                              # fold gamma (rows)
        w_qkvT_l = w_qkvT_l * qscale                                       # fold q-scale (cols)
        b_qkv_l = b_qkv_l * qscale
        p96 = p96.at[base:base + D].set(w_qkvT_l)
        p96 = p96.at[base + D:base + D + 1].set(b_qkv_l)

    # ------ p128: mlp fc1, ln2 affine folded ------
    p128 = jnp.zeros((P128_ROWS, DM), jnp.float32)
    for l in range(L):
        base = l * FC1_STRIDE
        w_fc1T_l = p['w_fc1'][l].T                                         # (D, DM)
        b_fc1_l = p['b_fc1'][l] + p['ln2_b'][l] @ w_fc1T_l                 # (1, DM)
        w_fc1T_l = w_fc1T_l * p['ln2_g'][l].T
        p128 = p128.at[base:base + D].set(w_fc1T_l)
        p128 = p128.at[base + D:base + D + 1].set(b_fc1_l)

    # ------ p16: metric head (lnf gamma folded), BN affine ------
    # b_head and lnf_b @ w_headT are omitted: constant per-feature bias cancels
    # exactly under training-mode BatchNorm.
    w_headT = p['w_head'].T * p['lnf_g'].T                                 # (D, E)
    p16 = jnp.concatenate([w_headT, p['bn_g'], p['bn_b']], axis=0)

    assert p32.shape == (P32_ROWS, D)
    assert p96.shape == (P96_ROWS, QKV)
    assert p128.shape == (P128_ROWS, DM)
    assert p16.shape == (P16_ROWS, E)
    return p32, p96, p128, p16


def deit_metric_forward(x, packed):
    patches = extract_patches(x.astype(jnp.float32))
    inputs = (patches,) + tuple(packed)
    vmem = pl.BlockSpec(memory_space=pltpu.MemorySpace.VMEM)
    # Gridless single-program kernel: total resident data is ~110 KB, far below
    # VMEM on v5e/v6e/v7x.  For production batches >> 2, switch to a 1-D batch
    # grid with dimension_semantics=("parallel",) to fill sublanes / both v7x TCs.
    return pl.pallas_call(
        deit_kernel,
        out_shape=jax.ShapeDtypeStruct((B, E), jnp.float32),
        in_specs=[vmem for _ in inputs],
        out_specs=vmem,
    )(*inputs)


if __name__ == "__main__":
    key = jax.random.PRNGKey(0)
    k_param, k_x = jax.random.split(key)
    params = init_params(k_param)
    packed = pack_params(params)
    x = jax.random.normal(k_x, (B, C, IMG, IMG), dtype=jnp.float32)  # NCHW like PyTorch

    out = jax.jit(deit_metric_forward)(x, packed)
    out = jax.block_until_ready(out)
    assert out.shape == (B, E)
    assert bool(jnp.all(jnp.isfinite(out)))
    print("KERNEL_OK")
</pallas_src>

<mosaic_0001>
module attributes {stable_mosaic.version = 11 : i64} {
  func.func @deit_kernel(%arg0: memref<10x192xf32, #tpu.memory_space<vmem>>, %arg1: memref<584x32xf32, #tpu.memory_space<vmem>>, %arg2: memref<80x96xf32, #tpu.memory_space<vmem>>, %arg3: memref<80x128xf32, #tpu.memory_space<vmem>>, %arg4: memref<34x16xf32, #tpu.memory_space<vmem>>, %arg5: memref<2x16xf32, #tpu.memory_space<vmem>>) attributes {dimension_semantics = [], scalar_prefetch = 0 : i64, scratch_operands = 0 : i64, tpu.core_type = #tpu.core_type<tc>} {
    %c0 = arith.constant 0 : index
    %c0_0 = arith.constant 0 : index
    %0 = vector.load %arg1[%c0, %c0_0] : memref<584x32xf32, #tpu.memory_space<vmem>>, vector<10x32xf32>
    %c16 = arith.constant 16 : index
    %c0_1 = arith.constant 0 : index
    %1 = vector.load %arg1[%c16, %c0_1] : memref<584x32xf32, #tpu.memory_space<vmem>>, vector<10x32xf32>
    %2 = vector.extract_strided_slice %1 {offsets = [0, 0], sizes = [10, 10], strides = [1, 1]} : vector<10x32xf32> to vector<10x10xf32>
    %c32 = arith.constant 32 : index
    %c0_2 = arith.constant 0 : index
    %3 = vector.load %arg1[%c32, %c0_2] : memref<584x32xf32, #tpu.memory_space<vmem>>, vector<2x32xf32>
    %4 = vector.extract_strided_slice %3 {offsets = [0, 0], sizes = [2, 10], strides = [1, 1]} : vector<2x32xf32> to vector<2x10xf32>
    %c40 = arith.constant 40 : index
    %c0_3 = arith.constant 0 : index
    %5 = vector.load %arg1[%c40, %c0_3] : memref<584x32xf32, #tpu.memory_space<vmem>>, vector<192x32xf32>
    %c0_4 = arith.constant 0 : index
    %c0_5 = arith.constant 0 : index
    %6 = vector.load %arg0[%c0_4, %c0_5] : memref<10x192xf32, #tpu.memory_space<vmem>>, vector<10x192xf32>
    %cst = arith.constant dense<0.000000e+00> : vector<10x32xf32>
    %7 = tpu.matmul %6, %5, %cst {dimension_numbers = #tpu.dot_dimension_numbers<[1], [0], [0], [1], [0, 0, 1, 1], [], []>} : vector<10x192xf32>, vector<192x32xf32>, vector<10x32xf32> -> vector<10x32xf32>
    %8 = arith.addf %7, %0 : vector<10x32xf32>
    %c264 = arith.constant 264 : index
    %c0_6 = arith.constant 0 : index
    %9 = vector.load %arg1[%c264, %c0_6] : memref<584x32xf32, #tpu.memory_space<vmem>>, vector<1x32xf32>
    %c272 = arith.constant 272 : index
    %c0_7 = arith.constant 0 : index
    %10 = vector.load %arg1[%c272, %c0_7] : memref<584x32xf32, #tpu.memory_space<vmem>>, vector<128x32xf32>
    %c400 = arith.constant 400 : index
    %c0_8 = arith.constant 0 : index
    %11 = vector.load %arg1[%c400, %c0_8] : memref<584x32xf32, #tpu.memory_space<vmem>>, vector<1x32xf32>
    %c0_9 = arith.constant 0 : index
    %c0_10 = arith.constant 0 : index
    %12 = vector.load %arg2[%c0_9, %c0_10] : memref<80x96xf32, #tpu.memory_space<vmem>>, vector<32x96xf32>
    %c32_11 = arith.constant 32 : index
    %c0_12 = arith.constant 0 : index
    %13 = vector.load %arg2[%c32_11, %c0_12] : memref<80x96xf32, #tpu.memory_space<vmem>>, vector<1x96xf32>
    %c0_13 = arith.constant 0 : index
    %c0_14 = arith.constant 0 : index
    %14 = vector.load %arg3[%c0_13, %c0_14] : memref<80x128xf32, #tpu.memory_space<vmem>>, vector<32x128xf32>
    %c32_15 = arith.constant 32 : index
    %c0_16 = arith.constant 0 : index
    %15 = vector.load %arg3[%c32_15, %c0_16] : memref<80x128xf32, #tpu.memory_space<vmem>>, vector<1x128xf32>
    %cst_17 = arith.constant dense<0.000000e+00> : vector<10xf32>
    %16 = vector.multi_reduction <add>, %8, %cst_17 [1] : vector<10x32xf32> to vector<10xf32>
    %17 = vector.shape_cast %16 : vector<10xf32> to vector<10x1xf32>
    %cst_18 = arith.constant 3.200000e+01 : f32
    %18 = vector.broadcast %cst_18 : f32 to vector<10x1xf32>
    %19 = arith.divf %17, %18 : vector<10x1xf32>
    %20 = vector.broadcast %19 : vector<10x1xf32> to vector<10x32xf32>
    %21 = arith.subf %8, %20 : vector<10x32xf32>
    %22 = arith.mulf %21, %21 : vector<10x32xf32>
    %cst_19 = arith.constant dense<0.000000e+00> : vector<10xf32>
    %23 = vector.multi_reduction <add>, %22, %cst_19 [1] : vector<10x32xf32> to vector<10xf32>
    %24 = vector.shape_cast %23 : vector<10xf32> to vector<10x1xf32>
    %cst_20 = arith.constant 3.200000e+01 : f32
    %25 = vector.broadcast %cst_20 : f32 to vector<10x1xf32>
    %26 = arith.divf %24, %25 : vector<10x1xf32>
    %27 = vector.broadcast %19 : vector<10x1xf32> to vector<10x32xf32>
    %28 = arith.subf %8, %27 : vector<10x32xf32>
    %cst_21 = arith.constant 9.99999997E-7 : f32
    %29 = vector.broadcast %cst_21 : f32 to vector<10x1xf32>
    %30 = arith.addf %26, %29 : vector<10x1xf32>
    %31 = math.rsqrt %30 : vector<10x1xf32>
    %32 = vector.broadcast %31 : vector<10x1xf32> to vector<10x32xf32>
    %33 = arith.mulf %28, %32 : vector<10x32xf32>
    %cst_22 = arith.constant dense<0.000000e+00> : vector<10x96xf32>
    %34 = tpu.matmul %33, %12, %cst_22 {dimension_numbers = #tpu.dot_dimension_numbers<[1], [0], [0], [1], [0, 0, 1, 1], [], []>} : vector<10x32xf32>, vector<32x96xf32>, vector<10x96xf32> -> vector<10x96xf32>
    %35 = vector.broadcast %13 : vector<1x96xf32> to vector<10x96xf32>
    %36 = arith.addf %34, %35 : vector<10x96xf32>
    %37 = vector.extract_strided_slice %36 {offsets = [0, 0], sizes = [10, 16], strides = [1, 1]} : vector<10x96xf32> to vector<10x16xf32>
    %38 = vector.extract_strided_slice %36 {offsets = [0, 32], sizes = [10, 16], strides = [1, 1]} : vector<10x96xf32> to vector<10x16xf32>
    %39 = vector.extract_strided_slice %36 {offsets = [0, 64], sizes = [10, 16], strides = [1, 1]} : vector<10x96xf32> to vector<10x16xf32>
    %cst_23 = arith.constant dense<0.000000e+00> : vector<10x10xf32>
    %40 = tpu.matmul %37, %38, %cst_23 {dimension_numbers = #tpu.dot_dimension_numbers<[1], [1], [0], [0], [0, 0, 1, 0], [], []>} : vector<10x16xf32>, vector<10x16xf32>, vector<10x10xf32> -> vector<10x10xf32>
    %41 = arith.addf %40, %2 : vector<10x10xf32>
    %cst_24 = arith.constant dense<0xFF800000> : vector<10xf32>
    %42 = vector.multi_reduction <maximumf>, %41, %cst_24 [1] : vector<10x10xf32> to vector<10xf32>
    %43 = vector.shape_cast %42 : vector<10xf32> to vector<10x1xf32>
    %44 = vector.broadcast %43 : vector<10x1xf32> to vector<10x10xf32>
    %45 = arith.subf %41, %44 : vector<10x10xf32>
    %46 = math.exp %45 : vector<10x10xf32>
    %cst_25 = arith.constant dense<0.000000e+00> : vector<10xf32>
    %47 = vector.multi_reduction <add>, %46, %cst_25 [1] : vector<10x10xf32> to vector<10xf32>
    %48 = vector.shape_cast %47 : vector<10xf32> to vector<10x1xf32>
    %49 = tpu.reciprocal %48 {approx = true} : vector<10x1xf32> -> vector<10x1xf32>
    %50 = vector.broadcast %49 : vector<10x1xf32> to vector<10x10xf32>
    %51 = arith.mulf %46, %50 : vector<10x10xf32>
    %cst_26 = arith.constant dense<0.000000e+00> : vector<10x16xf32>
    %52 = tpu.matmul %51, %39, %cst_26 {dimension_numbers = #tpu.dot_dimension_numbers<[1], [0], [0], [1], [0, 0, 1, 1], [], []>} : vector<10x10xf32>, vector<10x16xf32>, vector<10x16xf32> -> vector<10x16xf32>
    %c232 = arith.constant 232 : index
    %c0_27 = arith.constant 0 : index
    %53 = vector.load %arg1[%c232, %c0_27] : memref<584x32xf32, #tpu.memory_space<vmem>>, vector<16x32xf32>
    %cst_28 = arith.constant dense<0.000000e+00> : vector<10x32xf32>
    %54 = tpu.matmul %52, %53, %cst_28 {dimension_numbers = #tpu.dot_dimension_numbers<[1], [0], [0], [1], [0, 0, 1, 1], [], []>} : vector<10x16xf32>, vector<16x32xf32>, vector<10x32xf32> -> vector<10x32xf32>
    %55 = vector.extract_strided_slice %36 {offsets = [0, 16], sizes = [10, 16], strides = [1, 1]} : vector<10x96xf32> to vector<10x16xf32>
    %56 = vector.extract_strided_slice %36 {offsets = [0, 48], sizes = [10, 16], strides = [1, 1]} : vector<10x96xf32> to vector<10x16xf32>
    %57 = vector.extract_strided_slice %36 {offsets = [0, 80], sizes = [10, 16], strides = [1, 1]} : vector<10x96xf32> to vector<10x16xf32>
    %cst_29 = arith.constant dense<0.000000e+00> : vector<10x10xf32>
    %58 = tpu.matmul %55, %56, %cst_29 {dimension_numbers = #tpu.dot_dimension_numbers<[1], [1], [0], [0], [0, 0, 1, 0], [], []>} : vector<10x16xf32>, vector<10x16xf32>, vector<10x10xf32> -> vector<10x10xf32>
    %59 = arith.addf %58, %2 : vector<10x10xf32>
    %cst_30 = arith.constant dense<0xFF800000> : vector<10xf32>
    %60 = vector.multi_reduction <maximumf>, %59, %cst_30 [1] : vector<10x10xf32> to vector<10xf32>
    %61 = vector.shape_cast %60 : vector<10xf32> to vector<10x1xf32>
    %62 = vector.broadcast %61 : vector<10x1xf32> to vector<10x10xf32>
    %63 = arith.subf %59, %62 : vector<10x10xf32>
    %64 = math.exp %63 : vector<10x10xf32>
    %cst_31 = arith.constant dense<0.000000e+00> : vector<10xf32>
    %65 = vector.multi_reduction <add>, %64, %cst_31 [1] : vector<10x10xf32> to vector<10xf32>
    %66 = vector.shape_cast %65 : vector<10xf32> to vector<10x1xf32>
    %67 = tpu.reciprocal %66 {approx = true} : vector<10x1xf32> -> vector<10x1xf32>
    %68 = vector.broadcast %67 : vector<10x1xf32> to vector<10x10xf32>
    %69 = arith.mulf %64, %68 : vector<10x10xf32>
    %cst_32 = arith.constant dense<0.000000e+00> : vector<10x16xf32>
    %70 = tpu.matmul %69, %57, %cst_32 {dimension_numbers = #tpu.dot_dimension_numbers<[1], [0], [0], [1], [0, 0, 1, 1], [], []>} : vector<10x10xf32>, vector<10x16xf32>, vector<10x16xf32> -> vector<10x16xf32>
    %c248 = arith.constant 248 : index
    %c0_33 = arith.constant 0 : index
    %71 = vector.load %arg1[%c248, %c0_33] : memref<584x32xf32, #tpu.memory_space<vmem>>, vector<16x32xf32>
    %cst_34 = arith.constant dense<0.000000e+00> : vector<10x32xf32>
    %72 = tpu.matmul %70, %71, %cst_34 {dimension_numbers = #tpu.dot_dimension_numbers<[1], [0], [0], [1], [0, 0, 1, 1], [], []>} : vector<10x16xf32>, vector<16x32xf32>, vector<10x32xf32> -> vector<10x32xf32>
    %73 = arith.addf %54, %72 : vector<10x32xf32>
    %74 = arith.addf %8, %73 : vector<10x32xf32>
    %75 = vector.broadcast %9 : vector<1x32xf32> to vector<10x32xf32>
    %76 = arith.addf %74, %75 : vector<10x32xf32>
    %cst_35 = arith.constant dense<0.000000e+00> : vector<10xf32>
    %77 = vector.multi_reduction <add>, %76, %cst_35 [1] : vector<10x32xf32> to vector<10xf32>
    %78 = vector.shape_cast %77 : vector<10xf32> to vector<10x1xf32>
    %cst_36 = arith.constant 3.200000e+01 : f32
    %79 = vector.broadcast %cst_36 : f32 to vector<10x1xf32>
    %80 = arith.divf %78, %79 : vector<10x1xf32>
    %81 = vector.broadcast %80 : vector<10x1xf32> to vector<10x32xf32>
    %82 = arith.subf %76, %81 : vector<10x32xf32>
    %83 = arith.mulf %82, %82 : vector<10x32xf32>
    %cst_37 = arith.constant dense<0.000000e+00> : vector<10xf32>
    %84 = vector.multi_reduction <add>, %83, %cst_37 [1] : vector<10x32xf32> to vector<10xf32>
    %85 = vector.shape_cast %84 : vector<10xf32> to vector<10x1xf32>
    %cst_38 = arith.constant 3.200000e+01 : f32
    %86 = vector.broadcast %cst_38 : f32 to vector<10x1xf32>
    %87 = arith.divf %85, %86 : vector<10x1xf32>
    %88 = vector.broadcast %80 : vector<10x1xf32> to vector<10x32xf32>
    %89 = arith.subf %76, %88 : vector<10x32xf32>
    %cst_39 = arith.constant 9.99999997E-7 : f32
    %90 = vector.broadcast %cst_39 : f32 to vector<10x1xf32>
    %91 = arith.addf %87, %90 : vector<10x1xf32>
    %92 = math.rsqrt %91 : vector<10x1xf32>
    %93 = vector.broadcast %92 : vector<10x1xf32> to vector<10x32xf32>
    %94 = arith.mulf %89, %93 : vector<10x32xf32>
    %cst_40 = arith.constant dense<0.000000e+00> : vector<10x128xf32>
    %95 = tpu.matmul %94, %14, %cst_40 {dimension_numbers = #tpu.dot_dimension_numbers<[1], [0], [0], [1], [0, 0, 1, 1], [], []>} : vector<10x32xf32>, vector<32x128xf32>, vector<10x128xf32> -> vector<10x128xf32>
    %96 = vector.broadcast %15 : vector<1x128xf32> to vector<10x128xf32>
    %97 = arith.addf %95, %96 : vector<10x128xf32>
    %cst_41 = arith.constant 5.000000e-01 : f32
    %98 = vector.broadcast %cst_41 : f32 to vector<10x128xf32>
    %99 = arith.mulf %98, %97 : vector<10x128xf32>
    %cst_42 = arith.constant 4.471500e-02 : f32
    %100 = vector.broadcast %cst_42 : f32 to vector<10x128xf32>
    %101 = arith.mulf %100, %97 : vector<10x128xf32>
    %102 = arith.mulf %101, %97 : vector<10x128xf32>
    %103 = arith.mulf %102, %97 : vector<10x128xf32>
    %104 = arith.addf %97, %103 : vector<10x128xf32>
    %cst_43 = arith.constant 0.797884583 : f32
    %105 = vector.broadcast %cst_43 : f32 to vector<10x128xf32>
    %106 = arith.mulf %105, %104 : vector<10x128xf32>
    %107 = math.tanh %106 : vector<10x128xf32>
    %cst_44 = arith.constant 1.000000e+00 : f32
    %108 = vector.broadcast %cst_44 : f32 to vector<10x128xf32>
    %109 = arith.addf %108, %107 : vector<10x128xf32>
    %110 = arith.mulf %99, %109 : vector<10x128xf32>
    %cst_45 = arith.constant dense<0.000000e+00> : vector<10x32xf32>
    %111 = tpu.matmul %110, %10, %cst_45 {dimension_numbers = #tpu.dot_dimension_numbers<[1], [0], [0], [1], [0, 0, 1, 1], [], []>} : vector<10x128xf32>, vector<128x32xf32>, vector<10x32xf32> -> vector<10x32xf32>
    %112 = vector.broadcast %11 : vector<1x32xf32> to vector<10x32xf32>
    %113 = arith.addf %111, %112 : vector<10x32xf32>
    %114 = arith.addf %76, %113 : vector<10x32xf32>
    %c440 = arith.constant 440 : index
    %c0_46 = arith.constant 0 : index
    %115 = vector.load %arg1[%c440, %c0_46] : memref<584x32xf32, #tpu.memory_space<vmem>>, vector<1x32xf32>
    %c448 = arith.constant 448 : index
    %c0_47 = arith.constant 0 : index
    %116 = vector.load %arg1[%c448, %c0_47] : memref<584x32xf32, #tpu.memory_space<vmem>>, vector<128x32xf32>
    %c576 = arith.constant 576 : index
    %c0_48 = arith.constant 0 : index
    %117 = vector.load %arg1[%c576, %c0_48] : memref<584x32xf32, #tpu.memory_space<vmem>>, vector<1x32xf32>
    %c40_49 = arith.constant 40 : index
    %c0_50 = arith.constant 0 : index
    %118 = vector.load %arg2[%c40_49, %c0_50] : memref<80x96xf32, #tpu.memory_space<vmem>>, vector<32x96xf32>
    %c72 = arith.constant 72 : index
    %c0_51 = arith.constant 0 : index
    %119 = vector.load %arg2[%c72, %c0_51] : memref<80x96xf32, #tpu.memory_space<vmem>>, vector<1x96xf32>
    %c40_52 = arith.constant 40 : index
    %c0_53 = arith.constant 0 : index
    %120 = vector.load %arg3[%c40_52, %c0_53] : memref<80x128xf32, #tpu.memory_space<vmem>>, vector<32x128xf32>
    %c72_54 = arith.constant 72 : index
    %c0_55 = arith.constant 0 : index
    %121 = vector.load %arg3[%c72_54, %c0_55] : memref<80x128xf32, #tpu.memory_space<vmem>>, vector<1x128xf32>
    %cst_56 = arith.constant dense<0.000000e+00> : vector<10xf32>
    %122 = vector.multi_reduction <add>, %114, %cst_56 [1] : vector<10x32xf32> to vector<10xf32>
    %123 = vector.shape_cast %122 : vector<10xf32> to vector<10x1xf32>
    %cst_57 = arith.constant 3.200000e+01 : f32
    %124 = vector.broadcast %cst_57 : f32 to vector<10x1xf32>
    %125 = arith.divf %123, %124 : vector<10x1xf32>
    %126 = vector.broadcast %125 : vector<10x1xf32> to vector<10x32xf32>
    %127 = arith.subf %114, %126 : vector<10x32xf32>
    %128 = arith.mulf %127, %127 : vector<10x32xf32>
    %cst_58 = arith.constant dense<0.000000e+00> : vector<10xf32>
    %129 = vector.multi_reduction <add>, %128, %cst_58 [1] : vector<10x32xf32> to vector<10xf32>
    %130 = vector.shape_cast %129 : vector<10xf32> to vector<10x1xf32>
    %cst_59 = arith.constant 3.200000e+01 : f32
    %131 = vector.broadcast %cst_59 : f32 to vector<10x1xf32>
    %132 = arith.divf %130, %131 : vector<10x1xf32>
    %133 = vector.broadcast %125 : vector<10x1xf32> to vector<10x32xf32>
    %134 = arith.subf %114, %133 : vector<10x32xf32>
    %cst_60 = arith.constant 9.99999997E-7 : f32
    %135 = vector.broadcast %cst_60 : f32 to vector<10x1xf32>
    %136 = arith.addf %132, %135 : vector<10x1xf32>
    %137 = math.rsqrt %136 : vector<10x1xf32>
    %138 = vector.broadcast %137 : vector<10x1xf32> to vector<10x32xf32>
    %139 = arith.mulf %134, %138 : vector<10x32xf32>
    %cst_61 = arith.constant dense<0.000000e+00> : vector<10x96xf32>
    %140 = tpu.matmul %139, %118, %cst_61 {dimension_numbers = #tpu.dot_dimension_numbers<[1], [0], [0], [1], [0, 0, 1, 1], [], []>} : vector<10x32xf32>, vector<32x96xf32>, vector<10x96xf32> -> vector<10x96xf32>
    %141 = vector.broadcast %119 : vector<1x96xf32> to vector<10x96xf32>
    %142 = arith.addf %140, %141 : vector<10x96xf32>
    %143 = vector.extract_strided_slice %142 {offsets = [0, 0], sizes = [10, 16], strides = [1, 1]} : vector<10x96xf32> to vector<10x16xf32>
    %144 = vector.extract_strided_slice %142 {offsets = [0, 32], sizes = [10, 16], strides = [1, 1]} : vector<10x96xf32> to vector<10x16xf32>
    %145 = vector.extract_strided_slice %142 {offsets = [0, 64], sizes = [10, 16], strides = [1, 1]} : vector<10x96xf32> to vector<10x16xf32>
    %cst_62 = arith.constant dense<0.000000e+00> : vector<10x10xf32>
    %146 = tpu.matmul %143, %144, %cst_62 {dimension_numbers = #tpu.dot_dimension_numbers<[1], [1], [0], [0], [0, 0, 1, 0], [], []>} : vector<10x16xf32>, vector<10x16xf32>, vector<10x10xf32> -> vector<10x10xf32>
    %147 = arith.addf %146, %2 : vector<10x10xf32>
    %cst_63 = arith.constant dense<0xFF800000> : vector<10xf32>
    %148 = vector.multi_reduction <maximumf>, %147, %cst_63 [1] : vector<10x10xf32> to vector<10xf32>
    %149 = vector.shape_cast %148 : vector<10xf32> to vector<10x1xf32>
    %150 = vector.broadcast %149 : vector<10x1xf32> to vector<10x10xf32>
    %151 = arith.subf %147, %150 : vector<10x10xf32>
    %152 = math.exp %151 : vector<10x10xf32>
    %cst_64 = arith.constant dense<0.000000e+00> : vector<10xf32>
    %153 = vector.multi_reduction <add>, %152, %cst_64 [1] : vector<10x10xf32> to vector<10xf32>
    %154 = vector.shape_cast %153 : vector<10xf32> to vector<10x1xf32>
    %155 = tpu.reciprocal %154 {approx = true} : vector<10x1xf32> -> vector<10x1xf32>
    %156 = vector.broadcast %155 : vector<10x1xf32> to vector<10x10xf32>
    %157 = arith.mulf %152, %156 : vector<10x10xf32>
    %cst_65 = arith.constant dense<0.000000e+00> : vector<10x16xf32>
    %158 = tpu.matmul %157, %145, %cst_65 {dimension_numbers = #tpu.dot_dimension_numbers<[1], [0], [0], [1], [0, 0, 1, 1], [], []>} : vector<10x10xf32>, vector<10x16xf32>, vector<10x16xf32> -> vector<10x16xf32>
    %c408 = arith.constant 408 : index
    %c0_66 = arith.constant 0 : index
    %159 = vector.load %arg1[%c408, %c0_66] : memref<584x32xf32, #tpu.memory_space<vmem>>, vector<16x32xf32>
    %cst_67 = arith.constant dense<0.000000e+00> : vector<10x32xf32>
    %160 = tpu.matmul %158, %159, %cst_67 {dimension_numbers = #tpu.dot_dimension_numbers<[1], [0], [0], [1], [0, 0, 1, 1], [], []>} : vector<10x16xf32>, vector<16x32xf32>, vector<10x32xf32> -> vector<10x32xf32>
    %161 = vector.extract_strided_slice %142 {offsets = [0, 16], sizes = [10, 16], strides = [1, 1]} : vector<10x96xf32> to vector<10x16xf32>
    %162 = vector.extract_strided_slice %142 {offsets = [0, 48], sizes = [10, 16], strides = [1, 1]} : vector<10x96xf32> to vector<10x16xf32>
    %163 = vector.extract_strided_slice %142 {offsets = [0, 80], sizes = [10, 16], strides = [1, 1]} : vector<10x96xf32> to vector<10x16xf32>
    %cst_68 = arith.constant dense<0.000000e+00> : vector<10x10xf32>
    %164 = tpu.matmul %161, %162, %cst_68 {dimension_numbers = #tpu.dot_dimension_numbers<[1], [1], [0], [0], [0, 0, 1, 0], [], []>} : vector<10x16xf32>, vector<10x16xf32>, vector<10x10xf32> -> vector<10x10xf32>
    %165 = arith.addf %164, %2 : vector<10x10xf32>
    %cst_69 = arith.constant dense<0xFF800000> : vector<10xf32>
    %166 = vector.multi_reduction <maximumf>, %165, %cst_69 [1] : vector<10x10xf32> to vector<10xf32>
    %167 = vector.shape_cast %166 : vector<10xf32> to vector<10x1xf32>
    %168 = vector.broadcast %167 : vector<10x1xf32> to vector<10x10xf32>
    %169 = arith.subf %165, %168 : vector<10x10xf32>
    %170 = math.exp %169 : vector<10x10xf32>
    %cst_70 = arith.constant dense<0.000000e+00> : vector<10xf32>
    %171 = vector.multi_reduction <add>, %170, %cst_70 [1] : vector<10x10xf32> to vector<10xf32>
    %172 = vector.shape_cast %171 : vector<10xf32> to vector<10x1xf32>
    %173 = tpu.reciprocal %172 {approx = true} : vector<10x1xf32> -> vector<10x1xf32>
    %174 = vector.broadcast %173 : vector<10x1xf32> to vector<10x10xf32>
    %175 = arith.mulf %170, %174 : vector<10x10xf32>
    %cst_71 = arith.constant dense<0.000000e+00> : vector<10x16xf32>
    %176 = tpu.matmul %175, %163, %cst_71 {dimension_numbers = #tpu.dot_dimension_numbers<[1], [0], [0], [1], [0, 0, 1, 1], [], []>} : vector<10x10xf32>, vector<10x16xf32>, vector<10x16xf32> -> vector<10x16xf32>
    %c424 = arith.constant 424 : index
    %c0_72 = arith.constant 0 : index
    %177 = vector.load %arg1[%c424, %c0_72] : memref<584x32xf32, #tpu.memory_space<vmem>>, vector<16x32xf32>
    %cst_73 = arith.constant dense<0.000000e+00> : vector<10x32xf32>
    %178 = tpu.matmul %176, %177, %cst_73 {dimension_numbers = #tpu.dot_dimension_numbers<[1], [0], [0], [1], [0, 0, 1, 1], [], []>} : vector<10x16xf32>, vector<16x32xf32>, vector<10x32xf32> -> vector<10x32xf32>
    %179 = arith.addf %160, %178 : vector<10x32xf32>
    %180 = arith.addf %114, %179 : vector<10x32xf32>
    %181 = vector.broadcast %115 : vector<1x32xf32> to vector<10x32xf32>
    %182 = arith.addf %180, %181 : vector<10x32xf32>
    %cst_74 = arith.constant dense<0.000000e+00> : vector<10xf32>
    %183 = vector.multi_reduction <add>, %182, %cst_74 [1] : vector<10x32xf32> to vector<10xf32>
    %184 = vector.shape_cast %183 : vector<10xf32> to vector<10x1xf32>
    %cst_75 = arith.constant 3.200000e+01 : f32
    %185 = vector.broadcast %cst_75 : f32 to vector<10x1xf32>
    %186 = arith.divf %184, %185 : vector<10x1xf32>
    %187 = vector.broadcast %186 : vector<10x1xf32> to vector<10x32xf32>
    %188 = arith.subf %182, %187 : vector<10x32xf32>
    %189 = arith.mulf %188, %188 : vector<10x32xf32>
    %cst_76 = arith.constant dense<0.000000e+00> : vector<10xf32>
    %190 = vector.multi_reduction <add>, %189, %cst_76 [1] : vector<10x32xf32> to vector<10xf32>
    %191 = vector.shape_cast %190 : vector<10xf32> to vector<10x1xf32>
    %cst_77 = arith.constant 3.200000e+01 : f32
    %192 = vector.broadcast %cst_77 : f32 to vector<10x1xf32>
    %193 = arith.divf %191, %192 : vector<10x1xf32>
    %194 = vector.broadcast %186 : vector<10x1xf32> to vector<10x32xf32>
    %195 = arith.subf %182, %194 : vector<10x32xf32>
    %cst_78 = arith.constant 9.99999997E-7 : f32
    %196 = vector.broadcast %cst_78 : f32 to vector<10x1xf32>
    %197 = arith.addf %193, %196 : vector<10x1xf32>
    %198 = math.rsqrt %197 : vector<10x1xf32>
    %199 = vector.broadcast %198 : vector<10x1xf32> to vector<10x32xf32>
    %200 = arith.mulf %195, %199 : vector<10x32xf32>
    %cst_79 = arith.constant dense<0.000000e+00> : vector<10x128xf32>
    %201 = tpu.matmul %200, %120, %cst_79 {dimension_numbers = #tpu.dot_dimension_numbers<[1], [0], [0], [1], [0, 0, 1, 1], [], []>} : vector<10x32xf32>, vector<32x128xf32>, vector<10x128xf32> -> vector<10x128xf32>
    %202 = vector.broadcast %121 : vector<1x128xf32> to vector<10x128xf32>
    %203 = arith.addf %201, %202 : vector<10x128xf32>
    %cst_80 = arith.constant 5.000000e-01 : f32
    %204 = vector.broadcast %cst_80 : f32 to vector<10x128xf32>
    %205 = arith.mulf %204, %203 : vector<10x128xf32>
    %cst_81 = arith.constant 4.471500e-02 : f32
    %206 = vector.broadcast %cst_81 : f32 to vector<10x128xf32>
    %207 = arith.mulf %206, %203 : vector<10x128xf32>
    %208 = arith.mulf %207, %203 : vector<10x128xf32>
    %209 = arith.mulf %208, %203 : vector<10x128xf32>
    %210 = arith.addf %203, %209 : vector<10x128xf32>
    %cst_82 = arith.constant 0.797884583 : f32
    %211 = vector.broadcast %cst_82 : f32 to vector<10x128xf32>
    %212 = arith.mulf %211, %210 : vector<10x128xf32>
    %213 = math.tanh %212 : vector<10x128xf32>
    %cst_83 = arith.constant 1.000000e+00 : f32
    %214 = vector.broadcast %cst_83 : f32 to vector<10x128xf32>
    %215 = arith.addf %214, %213 : vector<10x128xf32>
    %216 = arith.mulf %205, %215 : vector<10x128xf32>
    %cst_84 = arith.constant dense<0.000000e+00> : vector<10x32xf32>
    %217 = tpu.matmul %216, %116, %cst_84 {dimension_numbers = #tpu.dot_dimension_numbers<[1], [0], [0], [1], [0, 0, 1, 1], [], []>} : vector<10x128xf32>, vector<128x32xf32>, vector<10x32xf32> -> vector<10x32xf32>
    %218 = vector.broadcast %117 : vector<1x32xf32> to vector<10x32xf32>
    %219 = arith.addf %217, %218 : vector<10x32xf32>
    %220 = arith.addf %182, %219 : vector<10x32xf32>
    %cst_85 = arith.constant dense<0.000000e+00> : vector<10xf32>
    %221 = vector.multi_reduction <add>, %220, %cst_85 [1] : vector<10x32xf32> to vector<10xf32>
    %222 = vector.shape_cast %221 : vector<10xf32> to vector<10x1xf32>
    %cst_86 = arith.constant 3.200000e+01 : f32
    %223 = vector.broadcast %cst_86 : f32 to vector<10x1xf32>
    %224 = arith.divf %222, %223 : vector<10x1xf32>
    %225 = vector.broadcast %224 : vector<10x1xf32> to vector<10x32xf32>
    %226 = arith.subf %220, %225 : vector<10x32xf32>
    %227 = arith.mulf %226, %226 : vector<10x32xf32>
    %cst_87 = arith.constant dense<0.000000e+00> : vector<10xf32>
    %228 = vector.multi_reduction <add>, %227, %cst_87 [1] : vector<10x32xf32> to vector<10xf32>
    %229 = vector.shape_cast %228 : vector<10xf32> to vector<10x1xf32>
    %cst_88 = arith.constant 3.200000e+01 : f32
    %230 = vector.broadcast %cst_88 : f32 to vector<10x1xf32>
    %231 = arith.divf %229, %230 : vector<10x1xf32>
    %232 = vector.broadcast %224 : vector<10x1xf32> to vector<10x32xf32>
    %233 = arith.subf %220, %232 : vector<10x32xf32>
    %cst_89 = arith.constant 9.99999997E-7 : f32
    %234 = vector.broadcast %cst_89 : f32 to vector<10x1xf32>
    %235 = arith.addf %231, %234 : vector<10x1xf32>
    %236 = math.rsqrt %235 : vector<10x1xf32>
    %237 = vector.broadcast %236 : vector<10x1xf32> to vector<10x32xf32>
    %238 = arith.mulf %233, %237 : vector<10x32xf32>
    %cst_90 = arith.constant dense<0.000000e+00> : vector<2x32xf32>
    %239 = tpu.matmul %4, %238, %cst_90 {dimension_numbers = #tpu.dot_dimension_numbers<[1], [0], [0], [1], [0, 0, 1, 1], [], []>} : vector<2x10xf32>, vector<10x32xf32>, vector<2x32xf32> -> vector<2x32xf32>
    %c0_91 = arith.constant 0 : index
    %c0_92 = arith.constant 0 : index
    %240 = vector.load %arg4[%c0_91, %c0_92] : memref<34x16xf32, #tpu.memory_space<vmem>>, vector<32x16xf32>
    %c32_93 = arith.constant 32 : index
    %c0_94 = arith.constant 0 : index
    %241 = vector.load %arg4[%c32_93, %c0_94] : memref<34x16xf32, #tpu.memory_space<vmem>>, vector<1x16xf32>
    %c33 = arith.constant 33 : index
    %c0_95 = arith.constant 0 : index
    %242 = vector.load %arg4[%c33, %c0_95] : memref<34x16xf32, #tpu.memory_space<vmem>>, vector<1x16xf32>
    %cst_96 = arith.constant dense<0.000000e+00> : vector<2x16xf32>
    %243 = tpu.matmul %239, %240, %cst_96 {dimension_numbers = #tpu.dot_dimension_numbers<[1], [0], [0], [1], [0, 0, 1, 1], [], []>} : vector<2x32xf32>, vector<32x16xf32>, vector<2x16xf32> -> vector<2x16xf32>
    %cst_97 = arith.constant dense<0.000000e+00> : vector<16xf32>
    %244 = vector.multi_reduction <add>, %243, %cst_97 [0] : vector<2x16xf32> to vector<16xf32>
    %245 = vector.shape_cast %244 : vector<16xf32> to vector<1x16xf32>
    %cst_98 = arith.constant 2.000000e+00 : f32
    %246 = vector.broadcast %cst_98 : f32 to vector<1x16xf32>
    %247 = arith.divf %245, %246 : vector<1x16xf32>
    %248 = vector.broadcast %247 : vector<1x16xf32> to vector<2x16xf32>
    %249 = arith.subf %243, %248 : vector<2x16xf32>
    %250 = arith.mulf %249, %249 : vector<2x16xf32>
    %cst_99 = arith.constant dense<0.000000e+00> : vector<16xf32>
    %251 = vector.multi_reduction <add>, %250, %cst_99 [0] : vector<2x16xf32> to vector<16xf32>
    %252 = vector.shape_cast %251 : vector<16xf32> to vector<1x16xf32>
    %cst_100 = arith.constant 2.000000e+00 : f32
    %253 = vector.broadcast %cst_100 : f32 to vector<1x16xf32>
    %254 = arith.divf %252, %253 : vector<1x16xf32>
    %255 = vector.broadcast %247 : vector<1x16xf32> to vector<2x16xf32>
    %256 = arith.subf %243, %255 : vector<2x16xf32>
    %cst_101 = arith.constant 9.99999974E-6 : f32
    %257 = vector.broadcast %cst_101 : f32 to vector<1x16xf32>
    %258 = arith.addf %254, %257 : vector<1x16xf32>
    %259 = math.rsqrt %258 : vector<1x16xf32>
    %260 = vector.broadcast %259 : vector<1x16xf32> to vector<2x16xf32>
    %261 = arith.mulf %256, %260 : vector<2x16xf32>
    %262 = vector.broadcast %241 : vector<1x16xf32> to vector<2x16xf32>
    %263 = arith.mulf %261, %262 : vector<2x16xf32>
    %264 = vector.broadcast %242 : vector<1x16xf32> to vector<2x16xf32>
    %265 = arith.addf %263, %264 : vector<2x16xf32>
    %c0_102 = arith.constant 0 : index
    %c0_103 = arith.constant 0 : index
    %266 = vector.load %arg5[%c0_102, %c0_103] : memref<2x16xf32, #tpu.memory_space<vmem>>, vector<2x16xf32>
    tpu.vector_store %arg5[%c0_102, %c0_103], %265 {strides = array<i32>} : memref<2x16xf32, #tpu.memory_space<vmem>>, vector<2x16xf32>,
    return
  }
}

</mosaic_0001>

<bundles_post_ra>
// kernel: deit_metric_forward.1
= control target key start
LH: loop header
LB: loop body
LE: loop exit
PB: predicated region body
PF: predicated region fallthrough
CT: control target
= control target key end

     0   :  { %v2955_v3 = vmov 0.0|0.0   ;;  %vm54_vm0 = vcmask 523264   ;;  %s3528_s0 = inlined_call_operand.vmem [shape: f32[10,192], index: 0, kind: input, shape index: {}]   ;;  %s3529_s1 = inlined_call_operand.vmem [shape: f32[584,32], index: 1, kind: input, shape index: {}]   ;;  %s3530_s2 = inlined_call_operand.vmem [shape: f32[80,96], index: 2, kind: input, shape index: {}]   ;;  %s3531_s3 = inlined_call_operand.vmem [shape: f32[80,128], index: 3, kind: input, shape index: {}]   ;;  %s3532_s4 = inlined_call_operand.vmem [shape: f32[34,16], index: 4, kind: input, shape index: {}]   ;;  %s3533_s5 = inlined_call_operand.hbm [shape: f32[2,16], index: 5, kind: output, shape index: {}]  }
   0x1   :  { %v26_v0 = vld [vmem:[%s3529_s1 + $0x28] sm:$0xff]  ;;  %v27_v1 = vld [vmem:[%s3529_s1 + $0x30] sm:$0xff]  ;;  %v28_v2 = vld [vmem:[%s3529_s1 + $0x38] sm:$0xff]  ;;  %2609 = vmatprep.subr.bf16.mxu0 %v2955_v3 }
   0x2   :  { %v2610_v4 = vpack.c.bf16 %v27_v1, %v26_v0  ;;  %v29_v5 = vld [vmem:[%s3529_s1 + $0x40] sm:$0xff]  ;;  %v30_v7 = vld [vmem:[%s3529_s1 + $0x48] sm:$0xff]  ;;  %v31_v8 = vld [vmem:[%s3529_s1 + $0x50] sm:$0xff] }
   0x3   :  { %v2613_v6 = vpack.c.bf16 %v29_v5, %v28_v2  ;;  %v2616_v9 = vpack.c.bf16 %v31_v8, %v30_v7  ;;  %v32_v10 = vld [vmem:[%s3529_s1 + $0x58] sm:$0xff]  ;;  %v33_v11 = vld [vmem:[%s3529_s1 + $0x60] sm:$0xff]  ;;  %v51_v12 = vld [vmem:[%s3528_s0 + $0x8] sm:$0xff] }
   0x4   :  { %2611 = vmatpush1.bf16.msra.mxu0 %v2610_v4  ;;  %2218 = vmatprep.mubr.msk.f32.mxu0 %vm54_vm0, %v51_v12 }
   0x5   :  { %2612 = vmatprep.subr.bf16.mxu0 %v2955_v3 }
   0x8   :  { %2614 = vmatpush1.bf16.msra.mxu0 %v2613_v6 }
   0x9   :  { %2615 = vmatprep.subr.bf16.mxu0 %v2955_v3 }
   0xa   :  { %10 = vsyncpa [#allocation3], 0  ;;  %v2619_v13 = vpack.c.bf16 %v33_v11, %v32_v10  ;;  %v34_v14 = vld [vmem:[%s3529_s1 + $0x68] sm:$0xff]  ;;  %v35_v15 = vld [vmem:[%s3529_s1 + $0x70] sm:$0xff]  ;;  %vm164_vm1 = vcmask 261120   ;;  %vm168_vm2 = vcmask 254976  }
   0xb   :  { %v2622_v16 = vpack.c.bf16 %v35_v15, %v34_v14  ;;  %v36_v17 = vld [vmem:[%s3529_s1 + $0x78] sm:$0xff]  ;;  %v37_v18 = vld [vmem:[%s3529_s1 + $0x80] sm:$0xff]  ;;  %v38_v20 = vld [vmem:[%s3529_s1 + $0x88] sm:$0xff]  ;;  %vm284_vm3 = vcmask 130048   ;;  %s2956_s12 = smov 96   ;;  %s2957_s13 = smov 80  }
   0xc   :  { %2617 = vmatpush1.bf16.msra.mxu0 %v2616_v9  ;;  %v2625_v19 = vpack.c.bf16 %v37_v18, %v36_v17  ;;  %v39_v21 = vld [vmem:[%s3529_s1 + $0x90] sm:$0xff]  ;;  %v40_v23 = vld [vmem:[%s3529_s1 + $0x98] sm:$0xff]  ;;  %v41_v24 = vld [vmem:[%s3529_s1 + $0xa0] sm:$0xff]  ;;  %s2958_s14 = smov 112   ;;  %vm368_vm5 = vcmask 80896   ;;  %vm372_vm6 = vcmask 74752  }
   0xd   :  { %2618 = vmatprep.subr.bf16.mxu0 %v2955_v3  ;;  %v2628_v22 = vpack.c.bf16 %v39_v21, %v38_v20  ;;  %v2631_v25 = vpack.c.bf16 %v41_v24, %v40_v23  ;;  %v42_v26 = vld [vmem:[%s3529_s1 + $0xa8] sm:$0xff]  ;;  %v43_v27 = vld [vmem:[%s3529_s1 + $0xb0] sm:$0xff]  ;;  %v44_v29 = vld [vmem:[%s3529_s1 + $0xb8] sm:$0xff]  ;;  %s2959_s19 = smov 64   ;;  %vm403_vm7 = vcmask 1041408   ;;  %vm2960_vm8 = vmmov 1  }
   0xe   :  { %v2634_v28 = vpack.c.bf16 %v43_v27, %v42_v26  ;;  %v45_v30 = vld [vmem:[%s3529_s1 + $0xc0] sm:$0xff]  ;;  %v46_v32 = vld [vmem:[%s3529_s1 + $0xc8] sm:$0xff]  ;;  %v47_v33 = vld [vmem:[%s3529_s1 + $0xd0] sm:$0xff]  ;;  %s2961_s20 = smov 48   ;;  %vm2962_vm10 = vmmov 0   ;;  %vm2170_vm11 = vcmask 123904  }
   0xf   :  { %v2637_v31 = vpack.c.bf16 %v45_v30, %v44_v29  ;;  %v2640_v34 = vpack.c.bf16 %v47_v33, %v46_v32  ;;  %v48_v35 = vld [vmem:[%s3529_s1 + $0xd8] sm:$0xff]  ;;  %v49_v36 = vld [vmem:[%s3529_s1 + $0xe0] sm:$0xff]  ;;  %v52_v40 = vld [vmem:[%s3528_s0 + $0x10] sm:$0x3] }
  0x10   :  { %2620 = vmatpush1.bf16.msra.mxu0 %v2619_v13  ;;  %v2643_v37 = vpack.c.bf16 %v49_v36, %v48_v35  ;;  %v50_v38 = vld [vmem:[%s3528_s0] sm:$0xff]  ;;  %v53_v39 = vld [vmem:[%s3528_s0 + $0x18] sm:$0x3]  ;;  %v22_v45 = vld [vmem:[%s3529_s1 + $0x8] sm:$0x3]  ;;  %s2964_s0 = smov [#allocation2]  }
  0x11   :  { %2621 = vmatprep.subr.bf16.mxu0 %v2955_v3  ;;  %v21_v41 = vld [vmem:[%s3529_s1] sm:$0xff]  ;;  %v155_v62 = vld [vmem:[%s3530_s2 + $0x8] sm:$0xff]  ;;  %v156_v63 = vld [vmem:[%s3530_s2 + $0x10] sm:$0xff]  ;;  %s2210_s28 = sshll.u32 %s2964_s0, 4  ;;  %s2211_s28 = int_to_ptr.vmem [resolvable:$true] %s2210_s28 }
  0x12   :  { %v154_v61 = vld [vmem:[%s3530_s2] sm:$0xff]  ;;  %v157_v1 = vld [vmem:[%s3530_s2 + $0x18] sm:$0xff]  ;;  %vm3139_vm4 = vmpackc.low %vm284_vm3, %vm284_vm3  ;;  %s2931_s29 = scalar_lea.vmem %s2211_s28, 32  ;;  %p2936_p1 = scmp.lt.s32.totalorder %s2211_s28, %s2211_s28 }
  0x13   :  { %v2645_v0 = vpack.c.bf16 %v155_v62, %v154_v61  ;;  %v2649_v2 = vpack.c.bf16 %v157_v1, %v156_v63  ;;  %v2220_v14 = vld [vmem:[%s3530_s2 + $0x20] ss:$0 sm:$0xff]  ;;  %v3156_v27 = vld [vmem:[%s3529_s1 + $0x18] sm:$0x3]  ;;  %vm3166_vm9 = vmpackc.low %vm403_vm7, %vm2960_vm8  ;;  %p2932_p0 = scmp.ne.s32.totalorder %s2211_s28, %s2931_s29  ;;  %p2937_p2 = scmp.lt.s32.totalorder %s2931_s29, %s2931_s29 }
  0x14   :  { %2623 = vmatpush1.bf16.msra.mxu0 %v2622_v16 }
  0x15   :  { %2624 = vmatprep.subr.bf16.mxu0 %v2955_v3  ;;  %2646 = vmatprep.subr.bf16.mxu1 %v2645_v0  ;;  %p2938_p3 = por %p2937_p2, %p2936_p1 }
  0x16   :  { %2648 = vmatpush3.bf16.msra.mxu1 %v2645_v0 }
  0x17   :  { %2650 = vmatprep.subr.bf16.mxu1 %v2649_v2  ;;  %p2939_p4 = pnand %p2938_p3, %p2932_p0 }
  0x18   :  { %2626 = vmatpush1.bf16.msra.mxu0 %v2625_v19 }
  0x19   :  { %2627 = vmatprep.subr.bf16.mxu0 %v2955_v3 }
  0x1a   :  { %2652 = vmatpush3.bf16.msra.mxu1 %v2649_v2 }
  0x1c   :  { %2629 = vmatpush1.bf16.msra.mxu0 %v2628_v22 }
  0x1d   :  { %2630 = vmatprep.subr.bf16.mxu0 %v2955_v3 }
  0x20   :  { %2632 = vmatpush1.bf16.msra.mxu0 %v2631_v25  ;;  %v3151_v25 = vld [vmem:[%s3529_s1 + $0x10] sm:$0xff] }
  0x21   :  { %2633 = vmatprep.subr.bf16.mxu0 %v2955_v3 }
  0x24   :  { %2635 = vmatpush1.bf16.msra.mxu0 %v2634_v28 }
  0x25   :  { %2636 = vmatprep.subr.bf16.mxu0 %v2955_v3 }
  0x28   :  { %2638 = vmatpush1.bf16.msra.mxu0 %v2637_v31 }
  0x29   :  { %2639 = vmatprep.subr.bf16.mxu0 %v2955_v3 }
  0x2c   :  { %2641 = vmatpush1.bf16.msra.mxu0 %v2640_v34 }
  0x2d   :  { %2642 = vmatprep.subr.bf16.mxu0 %v2955_v3 }
  0x30   :  { %2644 = vmatpush1.bf16.msra.mxu0 %v2643_v37 }
  0x33   :  { %126 = vmatmul.mubr.f32.vlgmr.msra.gmra.mrb[0].mxu0 %v50_v38 }
  0x34   :  { %2219 = vmatprep.mubr.msk.f32.mxu0 %vm54_vm0, %v53_v39 }
  0x37   :  { %131 = vmatmul.mubr.f32.gmra.mrb[2].mxu0 %v52_v40 }
 0x106   :  { %v127_v42 = vpop.f32.mrb[0].mxu0 }
 0x107   :  { %v3096_v43 = vadd.f32 %v127_v42, %v21_v41  ;;  %v129_v44 = vpop.f32.mrb[1].mxu0 }
 0x109   :  { %v165_v46 = vsel %vm164_vm1, %v3096_v43, 0.0 }
 0x10a   :  { %v132_v47 = vpop.f32.mrb[2].mxu0  ;;  %166 = vadd.xlane.f32.xlu0 %v165_v46 }
 0x10b   :  { %v3103_v48 = vadd.f32 %v132_v47, %v22_v45  ;;  %v134_v49 = vpop.f32.mrb[3].mxu0 }
 0x10d   :  { %v169_v50 = vsel %vm168_vm2, %v3103_v48, 0.0 }
 0x10e   :  { %170 = vadd.xlane.f32.xlu0 %v169_v50 }
 0x197   :  { %v167_v51 = vpop.xlane.xlu0 %166 }
 0x198   :  { %v173_v52 = vmul.f32 0.03125, %v167_v51 }
 0x19a   :  { %v175_v53 = vsub.f32 %v3096_v43, %v173_v52 }
 0x19b   :  { %v171_v54 = vpop.xlane.xlu0 %170 }
 0x19c   :  { %v174_v55 = vmul.f32 0.03125, %v171_v54  ;;  %v177_v56 = vmul.f32 %v175_v53, %v175_v53 }
 0x19e   :  { %v176_v57 = vsub.f32 %v3103_v48, %v174_v55  ;;  %v179_v58 = vsel %vm164_vm1, %v177_v56, 0.0 }
 0x19f   :  { %180 = vadd.xlane.f32.xlu1 %v179_v58 }
 0x1a0   :  { %v178_v59 = vmul.f32 %v176_v57, %v176_v57 }
 0x1a2   :  { %v182_v60 = vsel %vm168_vm2, %v178_v59, 0.0 }
 0x1a3   :  { %183 = vadd.xlane.f32.xlu1 %v182_v60 }
 0x22c   :  { %v181_v4 = vpop.xlane.xlu1 %180 }
 0x22d   :  { %v185_v5 = vmul.f32 0.03125, %v181_v4 }
 0x22f   :  { %v187_v6 = vadd.f32 1e-06, %v185_v5 }
 0x230   :  { %v184_v7 = vpop.xlane.xlu1 %183 }
 0x231   :  { %2869 = vrsqrt.f32 %v187_v6  ;;  %v186_v8 = vmul.f32 0.03125, %v184_v7 }
 0x233   :  { %v188_v9 = vadd.f32 1e-06, %v186_v8 }
 0x235   :  { %2871 = vrsqrt.f32 %v188_v9 }
 0x23b   :  { %v2870_v10 = vpop.eup %2869 }
 0x23c   :  { %v191_v11 = vmul.f32 %v2870_v10, %v175_v53 }
 0x23e   :  { %2401 = vmatprep.mubr.msk.f32.mxu1 %vm164_vm1, %v191_v11 }
 0x23f   :  { %v2872_v12 = vpop.eup %2871 }
 0x240   :  { %v192_v13 = vmul.f32 %v2872_v12, %v176_v57 }
 0x242   :  { %2402 = vmatmul.mubr.msk.f32.vlgmr.msra.gmra.mrb[0].mxu1 %vm164_vm1, %v192_v13 }
 0x315   :  { %v2403_v15 = vpop.f32.mrb[0].mxu1 }
 0x316   :  { %v275_v16 = vadd.f32 %v2403_v15, %v2220_v14  ;;  %v269_v17 = vpop.f32.mrb[1].mxu1 }
 0x317   :  { %v270_v18 = vadd.f32 %v2220_v14, %v269_v17 }
 0x319   :  { %2408 = vmatprep.mubr.msk.f32.mxu1 %vm284_vm3, %v270_v18  ;;  %v3129_v19 = vpack.i.bf16 %v275_v16, %v270_v18 }
 0x31b   :  { %2830 = vrot.lane.b32.xlu0 %v3129_v19, %s2956_s12 }
 0x31f   :  { %2840 = vrot.lane.b32.xlu0 %v3129_v19, %s2957_s13 }
 0x323   :  { %483 = vrot.lane.b32.xlu0 %v270_v18, %s2958_s14 }
 0x327   :  { %485 = vrot.lane.b32.xlu0 %v275_v16, %s2958_s14 }
 0x38d   :  { %v2831_v20 = vpop.permute.xlu0 %2830 }
 0x38e   :  { %v2833_v21 = vunpack.i.h.bf16 %v2831_v20  ;;  %v2832_v22 = vunpack.i.l.bf16 %v2831_v20 }
 0x390   :  { %v2653_v24 = vpack.c.bf16 %v2833_v21, %v2832_v22  ;;  %v684_v21 = vld [vmem:[%s3529_s1 + $0xf8] sm:$0xff]  ;;  %v685_v22 = vld [vmem:[%s3529_s1 + $0x100] sm:$0xff] }
 0x391   :  { %v2841_v46 = vpop.permute.xlu0 %2840 }
 0x392   :  { %2655 = vmatprep.subr.msk.bf16.mxu1 %vm3139_vm4, %v2653_v24  ;;  %v2843_v49 = vunpack.i.h.bf16 %v2841_v46  ;;  %v2842_v50 = vunpack.i.l.bf16 %v2841_v46 }
 0x393   :  { %2658 = vmatpush3.bf16.xpose.msk.msra.mxu1 %vm3139_vm4, %v2653_v24  ;;  %v2677_v24 = vpack.c.bf16 %v685_v22, %v684_v21  ;;  %v144_v21 = vld [vmem:[%s3529_s1 + $0x148] sm:$0xff] }
 0x394   :  { %v2665_v55 = vpack.c.bf16 %v2843_v49, %v2842_v50 }
 0x395   :  { %v484_v60 = vpop.permute.xlu0 %483 }
 0x399   :  { %v486_v61 = vpop.permute.xlu0 %485 }
 0x39a   :  { %2409 = vmatmul.mubr.msk.f32.vlgmr.msra.gmra.mrb[2].mxu1 %vm284_vm3, %v275_v16 }
 0x46d   :  { %v2410_v26 = vpop.f32.mrb[2].mxu1 }
 0x46e   :  { %v359_v28 = vpop.f32.mrb[3].mxu1  ;;  %v365_v30 = vadd.f32 %v2410_v26, %v3156_v27 }
 0x46f   :  { %v360_v29 = vadd.f32 %v359_v28, %v3151_v25 }
 0x470   :  { %v373_v32 = vsel %vm372_vm6, %v365_v30, -inf }
 0x471   :  { %v369_v31 = vsel %vm368_vm5, %v360_v29, -inf }
 0x472   :  { %370 = vmax.xlane.f32.xlu1 %v369_v31 }
 0x476   :  { %374 = vmax.xlane.f32.xlu1 %v373_v32 }
 0x4ff   :  { %v371_v33 = vpop.xlane.xlu1 %370 }
 0x500   :  { %v376_v34 = vsub.f32 %v360_v29, %v371_v33  ;;  %v481_v33 = vld [vmem:[%s3529_s1 + $0xe8] sm:$0xff] }
 0x502   :  { %v378_v37 = vmul.f32 1.442695, %v376_v34  ;;  %v482_v34 = vld [vmem:[%s3529_s1 + $0xf0] sm:$0xff] }
 0x503   :  { %v375_v35 = vpop.xlane.xlu1 %374 }
 0x504   :  { %v377_v36 = vsub.f32 %v365_v30, %v375_v35  ;;  %v2681_v35 = vpack.c.bf16 %v482_v34, %v481_v33  ;;  %v150_v33 = vld [vmem:[%s3529_s1 + $0x178] sm:$0xff] }
 0x506   :  { %v380_v38 = vmul.f32 1.442695, %v377_v36 }
 0x508   :  { %2873 = vpow2.f32 %v380_v38 }
 0x509   :  { %2875 = vpow2.f32 %v378_v37 }
 0x512   :  { %v2874_v39 = vpop.eup %2873 }
 0x513   :  { %v385_v40 = vsel %vm372_vm6, %v2874_v39, 0.0  ;;  %v2876_v41 = vpop.eup %2875 }
 0x514   :  { %386 = vadd.xlane.f32.xlu1 %v385_v40  ;;  %v382_v42 = vsel %vm368_vm5, %v2876_v41, 0.0 }
 0x518   :  { %383 = vadd.xlane.f32.xlu1 %v382_v42 }
 0x529   :  { %2835 = vrot.lane.b32.xlu1 %v3129_v19, %s2959_s19 }
 0x5a1   :  { %v387_v44 = vpop.xlane.xlu1 %386 }
 0x5a2   :  { %2877 = vrcp.f32 %v387_v44 }
 0x5a5   :  { %v384_v45 = vpop.xlane.xlu1 %383 }
 0x5a6   :  { %2879 = vrcp.f32 %v384_v45 }
 0x5a9   :  { %v2836_v47 = vpop.permute.xlu1 %2835 }
 0x5aa   :  { %v2838_v51 = vunpack.i.h.bf16 %v2836_v47  ;;  %v2837_v52 = vunpack.i.l.bf16 %v2836_v47 }
 0x5ac   :  { %v2659_v54 = vpack.c.bf16 %v2838_v51, %v2837_v52  ;;  %v2878_v56 = vpop.eup %2877 }
 0x5ad   :  { %v391_v59 = vmul.f32 %v2878_v56, %v2874_v39  ;;  %v2241_v39 = vld [vmem:[%s3529_s1 + $0x108] ss:$0 sm:$0xff] }
 0x5ae   :  { %2661 = vmatprep.subr.msk.bf16.mxu1 %vm3166_vm9, %v2659_v54 }
 0x5af   :  { %2664 = vmatpush3.bf16.msk.msra.mxu1 %vm3166_vm9, %v2659_v54 }
 0x5b0   :  { %v2880_v57 = vpop.eup %2879  ;;  %2667 = vmatprep.subr.msk.bf16.mxu1 %vm3139_vm4, %v2665_v55 }
 0x5b1   :  { %v390_v58 = vmul.f32 %v2880_v57, %v2876_v41 }
 0x5b3   :  { %2415 = vmatprep.mubr.msk.f32.mxu1 %vm368_vm5, %v390_v58  ;;  %v159_v58 = vld [vmem:[%s3531_s3] sm:$0xff] }
 0x5b4   :  { %2416 = vmatmul.mubr.msk.f32.vlgmr.msra.gmra.mrb[4].mxu1 %vm368_vm5, %v391_v59  ;;  %v160_v59 = vld [vmem:[%s3531_s3 + $0x8] sm:$0xff] }
 0x5b5   :  { %2422 = vmatprep.mubr.msk.f32.mxu1 %vm284_vm3, %v484_v60  ;;  %v161_v60 = vld [vmem:[%s3531_s3 + $0x10] sm:$0xff] }
 0x5b8   :  { %2670 = vmatpush3.bf16.xpose.msk.msra.mxu1 %vm3139_vm4, %v2665_v55 }
 0x5bf   :  { %2423 = vmatmul.mubr.msk.f32.vlgmr.msra.gmra.mrb[6].mxu1 %vm284_vm3, %v486_v61  ;;  %v2685_v61 = vpack.c.bf16 %v160_v59, %v159_v58 }
 0x687   :  { %v2417_v62 = vpop.f32.mrb[4].mxu1 }
 0x688   :  { %v472_v63 = vpop.f32.mrb[5].mxu1 }
 0x692   :  { %v2424_v0 = vpop.f32.mrb[6].mxu1 }
 0x693   :  { %v571_v1 = vadd.f32 %v2424_v0, %v3156_v27  ;;  %v565_v2 = vpop.f32.mrb[7].mxu1  ;;  %v137_v0 = vld [vmem:[%s3529_s1 + $0x110] sm:$0xff] }
 0x694   :  { %v566_v4 = vadd.f32 %v565_v2, %v3151_v25 }
 0x695   :  { %v577_v5 = vsel %vm372_vm6, %v571_v1, -inf }
 0x696   :  { %578 = vmax.xlane.f32.xlu0 %v577_v5  ;;  %v574_v6 = vsel %vm368_vm5, %v566_v4, -inf }
 0x697   :  { %575 = vmax.xlane.f32.xlu1 %v574_v6 }
 0x6a8   :  { %2845 = vrot.lane.b32.xlu1 %v3129_v19, %s2961_s20 }
 0x723   :  { %v579_v7 = vpop.xlane.xlu0 %578 }
 0x724   :  { %v581_v8 = vsub.f32 %v571_v1, %v579_v7  ;;  %v576_v9 = vpop.xlane.xlu1 %575  ;;  %v138_v1 = vld [vmem:[%s3529_s1 + $0x118] sm:$0xff] }
 0x725   :  { %v580_v10 = vsub.f32 %v566_v4, %v576_v9  ;;  %v2693_v2 = vpack.c.bf16 %v138_v1, %v137_v0  ;;  %v2245_v0 = vld [vmem:[%s3529_s1 + $0x190] ss:$0 sm:$0xff] }
 0x726   :  { %v584_v11 = vmul.f32 1.442695, %v581_v8 }
 0x727   :  { %v582_v12 = vmul.f32 1.442695, %v580_v10  ;;  %2694 = vmatprep.subr.bf16.mxu0 %v2693_v2 }
 0x728   :  { %v2846_v13 = vpop.permute.xlu1 %2845  ;;  %2696 = vmatpush3.bf16.msra.mxu0 %v2693_v2 }
 0x729   :  { %2881 = vpow2.f32 %v582_v12  ;;  %v2848_v14 = vunpack.i.h.bf16 %v2846_v13  ;;  %v2847_v15 = vunpack.i.l.bf16 %v2846_v13 }
 0x72a   :  { %2883 = vpow2.f32 %v584_v11 }
 0x72b   :  { %v2671_v16 = vpack.c.bf16 %v2848_v14, %v2847_v15  ;;  %v139_v14 = vld [vmem:[%s3529_s1 + $0x120] sm:$0xff]  ;;  %v140_v15 = vld [vmem:[%s3529_s1 + $0x128] sm:$0xff] }
 0x72d   :  { %2673 = vmatprep.subr.msk.bf16.mxu1 %vm3166_vm9, %v2671_v16 }
 0x72e   :  { %2676 = vmatpush3.bf16.msk.msra.mxu1 %vm3166_vm9, %v2671_v16  ;;  %v2697_v16 = vpack.c.bf16 %v140_v15, %v139_v14 }
 0x72f   :  { %2678 = vmatprep.subr.bf16.mxu1 %v2677_v24 }
 0x730   :  { %2698 = vmatprep.subr.bf16.mxu0 %v2697_v16 }
 0x731   :  { %2700 = vmatpush3.bf16.msra.mxu0 %v2697_v16 }
 0x733   :  { %v2882_v17 = vpop.eup %2881 }
 0x734   :  { %v586_v18 = vsel %vm368_vm5, %v2882_v17, 0.0  ;;  %v2884_v19 = vpop.eup %2883 }
 0x735   :  { %587 = vadd.xlane.f32.xlu0 %v586_v18  ;;  %v589_v20 = vsel %vm372_vm6, %v2884_v19, 0.0  ;;  %v142_v18 = vld [vmem:[%s3529_s1 + $0x138] sm:$0xff] }
 0x739   :  { %590 = vadd.xlane.f32.xlu0 %v589_v20  ;;  %v143_v20 = vld [vmem:[%s3529_s1 + $0x140] sm:$0xff] }
 0x73a   :  { %v2705_v22 = vpack.c.bf16 %v144_v21, %v143_v20  ;;  %v1086_v20 = vld [vmem:[%s3530_s2 + $0x38] sm:$0xff] }
 0x7c2   :  { %v588_v26 = vpop.xlane.xlu0 %587 }
 0x7c3   :  { %2885 = vrcp.f32 %v588_v26  ;;  %v146_v26 = vld [vmem:[%s3529_s1 + $0x158] sm:$0xff] }
 0x7c6   :  { %v591_v28 = vpop.xlane.xlu0 %590 }
 0x7c7   :  { %2887 = vrcp.f32 %v591_v28 }
 0x7cd   :  { %v2886_v29 = vpop.eup %2885 }
 0x7ce   :  { %v594_v30 = vmul.f32 %v2886_v29, %v2882_v17  ;;  %v141_v17 = vld [vmem:[%s3529_s1 + $0x130] sm:$0xff]  ;;  %v147_v29 = vld [vmem:[%s3529_s1 + $0x160] sm:$0xff] }
 0x7d0   :  { %2429 = vmatprep.mubr.msk.f32.mxu1 %vm368_vm5, %v594_v30  ;;  %v148_v30 = vld [vmem:[%s3529_s1 + $0x168] sm:$0xff] }
 0x7d1   :  { %v2888_v31 = vpop.eup %2887 }
 0x7d2   :  { %v595_v32 = vmul.f32 %v2888_v31, %v2884_v19  ;;  %v2701_v19 = vpack.c.bf16 %v142_v18, %v141_v17  ;;  %v149_v31 = vld [vmem:[%s3529_s1 + $0x170] sm:$0xff]  ;;  %v1084_v18 = vld [vmem:[%s3530_s2 + $0x28] sm:$0xff] }
 0x7d3   :  { %v2717_v34 = vpack.c.bf16 %v150_v33, %v149_v31 }
 0x7d4   :  { %2430 = vmatmul.mubr.msk.f32.vlgmr.msra.gmra.mrb[8].mxu1 %vm368_vm5, %v595_v32  ;;  %2702 = vmatprep.subr.bf16.mxu0 %v2701_v19  ;;  %v2713_v32 = vpack.c.bf16 %v148_v30, %v147_v29 }
 0x7d5   :  { %2680 = vmatpush3.bf16.msra.mxu1 %v2677_v24  ;;  %2704 = vmatpush3.bf16.msra.mxu0 %v2701_v19  ;;  %v145_v24 = vld [vmem:[%s3529_s1 + $0x150] sm:$0xff] }
 0x7d6   :  { %2682 = vmatprep.subr.bf16.mxu1 %v2681_v35  ;;  %2706 = vmatprep.subr.bf16.mxu0 %v2705_v22  ;;  %v2709_v28 = vpack.c.bf16 %v146_v26, %v145_v24  ;;  %v1085_v19 = vld [vmem:[%s3530_s2 + $0x30] sm:$0xff] }
 0x7d7   :  { %v2725_v21 = vpack.c.bf16 %v1085_v19, %v1084_v18 }
 0x7d9   :  { %2708 = vmatpush3.bf16.msra.mxu0 %v2705_v22  ;;  %v1087_v22 = vld [vmem:[%s3530_s2 + $0x40] sm:$0xff] }
 0x7da   :  { %2710 = vmatprep.subr.bf16.mxu0 %v2709_v28  ;;  %v2729_v24 = vpack.c.bf16 %v1087_v22, %v1086_v20 }
 0x7dd   :  { %2712 = vmatpush3.bf16.msra.mxu0 %v2709_v28 }
 0x7de   :  { %2714 = vmatprep.subr.bf16.mxu0 %v2713_v32 }
 0x7e1   :  { %2716 = vmatpush3.bf16.msra.mxu0 %v2713_v32 }
 0x7e2   :  { %2718 = vmatprep.subr.bf16.mxu0 %v2717_v34 }
 0x7e5   :  { %2720 = vmatpush3.bf16.msra.mxu0 %v2717_v34 }
 0x8a7   :  { %v2431_v36 = vpop.f32.mrb[8].mxu1 }
 0x8a8   :  { %v675_v37 = vpop.f32.mrb[9].mxu1 }
 0x8a9   :  { %2436 = vmatprep.mubr.msk.f32.mxu1 %vm284_vm3, %v675_v37 }
 0x8aa   :  { %2437 = vmatmul.mubr.msk.f32.vlgmr.msra.gmra.mrb[10].mxu1 %vm284_vm3, %v2431_v36  ;;  %v152_v36 = vld [vmem:[%s3529_s1 + $0x188] sm:$0xff] }
 0x8ab   :  { %2684 = vmatpush3.bf16.msra.mxu1 %v2681_v35  ;;  %2443 = vmatprep.mubr.msk.f32.mxu1 %vm284_vm3, %v472_v63  ;;  %v151_v35 = vld [vmem:[%s3529_s1 + $0x180] sm:$0xff] }
 0x8ac   :  { %2686 = vmatprep.subr.bf16.mxu1 %v2685_v61  ;;  %v2721_v37 = vpack.c.bf16 %v152_v36, %v151_v35 }
 0x8ae   :  { %2722 = vmatprep.subr.bf16.mxu0 %v2721_v37 }
 0x8af   :  { %2724 = vmatpush3.bf16.msra.mxu0 %v2721_v37  ;;  %v2246_v37 = vld [vmem:[%s3530_s2 + $0x48] ss:$0 sm:$0xff] }
 0x8b2   :  { %2444 = vmatmul.mubr.msk.f32.vlgmr.msra.gmra.mrb[10].mxu1 %vm284_vm3, %v2417_v62  ;;  %v162_v62 = vld [vmem:[%s3531_s3 + $0x18] sm:$0xff] }
 0x8b3   :  { %v2689_v63 = vpack.c.bf16 %v162_v62, %v161_v60  ;;  %2688 = vmatpush3.bf16.msra.mxu1 %v2685_v61 }
 0x8b5   :  { %2690 = vmatprep.subr.bf16.mxu1 %v2689_v63 }
 0x8b7   :  { %2692 = vmatpush3.bf16.msra.mxu1 %v2689_v63 }
 0x8b8   :  { %2726 = vmatprep.subr.bf16.mxu1 %v2725_v21 }
 0x985   :  { %v2445_v38 = vpop.f32.mrb[10].mxu1 }
 0x986   :  { %v839_v40 = vpop.f32.mrb[11].mxu1  ;;  %v849_v41 = vadd.f32 %v2445_v38, %v3103_v48  ;;  %v2242_v38 = vld [vmem:[%s3531_s3 + $0x20] ss:$0 sm:$0xff] }
 0x987   :  { %v848_v42 = vadd.f32 %v839_v40, %v3096_v43 }
 0x988   :  { %v3219_v45 = vadd.f32 %v2241_v39, %v849_v41 }
 0x989   :  { %v3217_v44 = vadd.f32 %v2241_v39, %v848_v42 }
 0x98a   :  { %v859_v47 = vsel %vm168_vm2, %v3219_v45, 0.0 }
 0x98b   :  { %v856_v46 = vsel %vm164_vm1, %v3217_v44, 0.0 }
 0x98c   :  { %857 = vadd.xlane.f32.xlu0 %v856_v46 }
 0x990   :  { %860 = vadd.xlane.f32.xlu0 %v859_v47 }
 0xa19   :  { %v858_v49 = vpop.xlane.xlu0 %857 }
 0xa1a   :  { %v862_v50 = vmul.f32 0.03125, %v858_v49 }
 0xa1c   :  { %v864_v51 = vsub.f32 %v3217_v44, %v862_v50 }
 0xa1d   :  { %v861_v52 = vpop.xlane.xlu0 %860 }
 0xa1e   :  { %v863_v48 = vmul.f32 0.03125, %v861_v52  ;;  %v866_v54 = vmul.f32 %v864_v51, %v864_v51 }
 0xa20   :  { %v865_v43 = vsub.f32 %v3219_v45, %v863_v48  ;;  %v868_v55 = vsel %vm164_vm1, %v866_v54, 0.0 }
 0xa21   :  { %869 = vadd.xlane.f32.xlu0 %v868_v55 }
 0xa22   :  { %v867_v56 = vmul.f32 %v865_v43, %v865_v43 }
 0xa24   :  { %v871_v57 = vsel %vm168_vm2, %v867_v56, 0.0 }
 0xa25   :  { %872 = vadd.xlane.f32.xlu0 %v871_v57 }
 0xaae   :  { %v870_v4 = vpop.xlane.xlu0 %869 }
 0xaaf   :  { %v874_v5 = vmul.f32 0.03125, %v870_v4 }
 0xab1   :  { %v876_v6 = vadd.f32 1e-06, %v874_v5 }
 0xab2   :  { %v873_v7 = vpop.xlane.xlu0 %872 }
 0xab3   :  { %2889 = vrsqrt.f32 %v876_v6  ;;  %v875_v8 = vmul.f32 0.03125, %v873_v7 }
 0xab5   :  { %v877_v9 = vadd.f32 1e-06, %v875_v8 }
 0xab7   :  { %2891 = vrsqrt.f32 %v877_v9 }
 0xabd   :  { %v2890_v10 = vpop.eup %2889 }
 0xabe   :  { %v880_v11 = vmul.f32 %v2890_v10, %v864_v51 }
 0xac0   :  { %2454 = vmatprep.mubr.msk.f32.mxu1 %vm164_vm1, %v880_v11 }
 0xac1   :  { %v2892_v12 = vpop.eup %2891 }
 0xac2   :  { %v881_v13 = vmul.f32 %v2892_v12, %v865_v43 }
 0xac4   :  { %2455 = vmatmul.mubr.msk.f32.vlgmr.msra.gmra.mrb[12].mxu1 %vm164_vm1, %v881_v13 }
 0xac5   :  { %2728 = vmatpush3.bf16.msra.mxu1 %v2725_v21 }
 0xac6   :  { %2730 = vmatprep.subr.bf16.mxu1 %v2729_v24 }
 0xac9   :  { %2732 = vmatpush3.bf16.msra.mxu1 %v2729_v24 }
 0xb97   :  { %v2456_v39 = vpop.f32.mrb[12].mxu1 }
 0xb98   :  { %v964_v40 = vadd.f32 %v2456_v39, %v2242_v38  ;;  %v958_v41 = vpop.f32.mrb[13].mxu1 }
 0xb99   :  { %v959_v42 = vadd.f32 %v2242_v38, %v958_v41 }
 0xb9a   :  { %v970_v46 = vmul.f32 0.044715, %v964_v40  ;;  %v968_v61 = vmul.f32 0.5, %v964_v40 }
 0xb9b   :  { %v969_v47 = vmul.f32 0.044715, %v959_v42  ;;  %v967_v59 = vmul.f32 0.5, %v959_v42 }
 0xb9c   :  { %v972_v49 = vmul.f32 %v970_v46, %v964_v40 }
 0xb9d   :  { %v971_v50 = vmul.f32 %v969_v47, %v959_v42 }
 0xb9e   :  { %v974_v51 = vmul.f32 %v972_v49, %v964_v40 }
 0xb9f   :  { %v973_v52 = vmul.f32 %v971_v50, %v959_v42 }
 0xba0   :  { %v976_v48 = vadd.f32 %v974_v51, %v964_v40 }
 0xba1   :  { %v975_v54 = vadd.f32 %v973_v52, %v959_v42 }
 0xba2   :  { %v978_v43 = vmul.f32 0.7978846, %v976_v48 }
 0xba3   :  { %v977_v55 = vmul.f32 0.7978846, %v975_v54 }
 0xba4   :  { %2893 = vtanh.f32 %v978_v43 }
 0xba5   :  { %2895 = vtanh.f32 %v977_v55 }
 0xbae   :  { %v2894_v56 = vpop.eup %2893 }
 0xbaf   :  { %v2896_v57 = vpop.eup %2895  ;;  %v982_v58 = vadd.f32 1.0, %v2894_v56 }
 0xbb0   :  { %v981_v60 = vadd.f32 1.0, %v2896_v57 }
 0xbb1   :  { %v984_v63 = vmul.f32 %v982_v58, %v968_v61 }
 0xbb2   :  { %v983_v62 = vmul.f32 %v981_v60, %v967_v59 }
 0xbb4   :  { %2489 = vmatprep.mubr.f32.mxu0 %v983_v62 }
 0xbb5   :  { %2490 = vmatmul.mubr.f32.vlgmr.msra.gmra.mrb[4].mxu0 %v984_v63 }
 0xc88   :  { %v2491_v1 = vpop.f32.mrb[4].mxu0 }
 0xc89   :  { %v1061_v2 = vadd.f32 %v2491_v1, %v2245_v0  ;;  %v1055_v4 = vpop.f32.mrb[5].mxu0 }
 0xc8a   :  { %v1056_v5 = vadd.f32 %v2245_v0, %v1055_v4 }
 0xc8b   :  { %v3298_v6 = vadd.f32 %v1061_v2, %v3219_v45 }
 0xc8c   :  { %v3301_v7 = vadd.f32 %v1056_v5, %v3217_v44 }
 0xc8d   :  { %v1097_v8 = vsel %vm168_vm2, %v3298_v6, 0.0 }
 0xc8e   :  { %1098 = vadd.xlane.f32.xlu0 %v1097_v8  ;;  %v1094_v9 = vsel %vm164_vm1, %v3301_v7, 0.0 }
 0xc8f   :  { %1095 = vadd.xlane.f32.xlu1 %v1094_v9 }
 0xd1b   :  { %v1099_v10 = vpop.xlane.xlu0 %1098 }
 0xd1c   :  { %v1101_v11 = vmul.f32 0.03125, %v1099_v10  ;;  %v1096_v12 = vpop.xlane.xlu1 %1095 }
 0xd1d   :  { %v1100_v13 = vmul.f32 0.03125, %v1096_v12 }
 0xd1e   :  { %v1103_v14 = vsub.f32 %v3298_v6, %v1101_v11 }
 0xd1f   :  { %v1102_v45 = vsub.f32 %v3301_v7, %v1100_v13 }
 0xd20   :  { %v1105_v16 = vmul.f32 %v1103_v14, %v1103_v14 }
 0xd21   :  { %v1104_v15 = vmul.f32 %v1102_v45, %v1102_v45 }
 0xd22   :  { %v1109_v17 = vsel %vm168_vm2, %v1105_v16, 0.0 }
 0xd23   :  { %v1106_v44 = vsel %vm164_vm1, %v1104_v15, 0.0 }
 0xd24   :  { %1107 = vadd.xlane.f32.xlu0 %v1106_v44 }
 0xd28   :  { %1110 = vadd.xlane.f32.xlu0 %v1109_v17 }
 0xdb1   :  { %v1108_v26 = vpop.xlane.xlu0 %1107 }
 0xdb2   :  { %v1112_v28 = vmul.f32 0.03125, %v1108_v26 }
 0xdb4   :  { %v1114_v29 = vadd.f32 1e-06, %v1112_v28 }
 0xdb5   :  { %v1111_v30 = vpop.xlane.xlu0 %1110 }
 0xdb6   :  { %2897 = vrsqrt.f32 %v1114_v29  ;;  %v1113_v31 = vmul.f32 0.03125, %v1111_v30 }
 0xdb8   :  { %v1115_v32 = vadd.f32 1e-06, %v1113_v31 }
 0xdba   :  { %2899 = vrsqrt.f32 %v1115_v32 }
 0xdc0   :  { %v2898_v33 = vpop.eup %2897 }
 0xdc1   :  { %v1118_v34 = vmul.f32 %v2898_v33, %v1102_v45 }
 0xdc3   :  { %2500 = vmatprep.mubr.msk.f32.mxu1 %vm164_vm1, %v1118_v34 }
 0xdc4   :  { %v2900_v35 = vpop.eup %2899 }
 0xdc5   :  { %v1119_v36 = vmul.f32 %v2900_v35, %v1103_v14 }
 0xdc7   :  { %2501 = vmatmul.mubr.msk.f32.vlgmr.msra.gmra.mrb[14].mxu1 %vm164_vm1, %v1119_v36 }
 0xe9a   :  { %v2502_v38 = vpop.f32.mrb[14].mxu1 }
 0xe9b   :  { %v1202_v39 = vadd.f32 %v2502_v38, %v2246_v37  ;;  %v1196_v40 = vpop.f32.mrb[15].mxu1 }
 0xe9c   :  { %v1197_v41 = vadd.f32 %v2246_v37, %v1196_v40  ;;  %v1607_v40 = vld [vmem:[%s3529_s1 + $0x1a8] sm:$0xff] }
 0xe9e   :  { %2507 = vmatprep.mubr.msk.f32.mxu1 %vm284_vm3, %v1197_v41  ;;  %v3329_v42 = vpack.i.bf16 %v1202_v39, %v1197_v41 }
 0xea0   :  { %2850 = vrot.lane.b32.xlu0 %v3329_v42, %s2956_s12 }
 0xf12   :  { %v2851_v46 = vpop.permute.xlu0 %2850 }
 0xf13   :  { %v2853_v47 = vunpack.i.h.bf16 %v2851_v46  ;;  %v2852_v49 = vunpack.i.l.bf16 %v2851_v46 }
 0xf15   :  { %v2733_v50 = vpack.c.bf16 %v2853_v47, %v2852_v49 }
 0xf17   :  { %2735 = vmatprep.subr.msk.bf16.mxu1 %vm3139_vm4, %v2733_v50 }
 0xf18   :  { %2738 = vmatpush3.bf16.xpose.msk.msra.mxu1 %vm3139_vm4, %v2733_v50 }
 0xf1f   :  { %2508 = vmatmul.mubr.msk.f32.vlgmr.msra.gmra.mrb[16].mxu1 %vm284_vm3, %v1202_v39 }
 0xff2   :  { %v2509_v51 = vpop.f32.mrb[16].mxu1 }
 0xff3   :  { %v1291_v52 = vadd.f32 %v2509_v51, %v3156_v27  ;;  %v1285_v48 = vpop.f32.mrb[17].mxu1 }
 0xff4   :  { %v1286_v54 = vadd.f32 %v1285_v48, %v3151_v25 }
 0xff5   :  { %v1297_v43 = vsel %vm372_vm6, %v1291_v52, -inf }
 0xff6   :  { %1298 = vmax.xlane.f32.xlu0 %v1297_v43  ;;  %v1294_v55 = vsel %vm368_vm5, %v1286_v54, -inf  ;;  %v1405_v43 = vld [vmem:[%s3529_s1 + $0x1a0] sm:$0xff] }
 0xff7   :  { %1295 = vmax.xlane.f32.xlu1 %v1294_v55 }
0x1008   :  { %2855 = vrot.lane.b32.xlu1 %v3329_v42, %s2959_s19 }
0x100c   :  { %1406 = vrot.lane.b32.xlu0 %v1197_v41, %s2958_s14  ;;  %2860 = vrot.lane.b32.xlu1 %v3329_v42, %s2957_s13  ;;  %v1608_v41 = vld [vmem:[%s3529_s1 + $0x1b0] sm:$0xff] }
0x100d   :  { %v2757_v50 = vpack.c.bf16 %v1608_v41, %v1607_v40  ;;  %v1075_v40 = vld [vmem:[%s3529_s1 + $0x200] sm:$0xff]  ;;  %v1076_v41 = vld [vmem:[%s3529_s1 + $0x208] sm:$0xff] }
0x1083   :  { %v1299_v56 = vpop.xlane.xlu0 %1298 }
0x1084   :  { %v1301_v57 = vsub.f32 %v1291_v52, %v1299_v56  ;;  %v1296_v58 = vpop.xlane.xlu1 %1295 }
0x1085   :  { %v1300_v59 = vsub.f32 %v1286_v54, %v1296_v58  ;;  %v1404_v54 = vld [vmem:[%s3529_s1 + $0x198] sm:$0xff] }
0x1086   :  { %v1304_v60 = vmul.f32 1.442695, %v1301_v57  ;;  %v2761_v55 = vpack.c.bf16 %v1405_v43, %v1404_v54  ;;  %v1082_v54 = vld [vmem:[%s3529_s1 + $0x238] sm:$0xff] }
0x1087   :  { %v1302_v61 = vmul.f32 1.442695, %v1300_v59  ;;  %v1407_v17 = vpop.permute.xlu0 %1406  ;;  %v2267_v59 = vld [vmem:[%s3529_s1 + $0x1b8] ss:$0 sm:$0xff] }
0x1088   :  { %2901 = vpow2.f32 %v1304_v60  ;;  %v2856_v62 = vpop.permute.xlu1 %2855 }
0x1089   :  { %v2858_v63 = vunpack.i.h.bf16 %v2856_v62  ;;  %v2857_v0 = vunpack.i.l.bf16 %v2856_v62  ;;  %2903 = vpow2.f32 %v1302_v61 }
0x108b   :  { %v2739_v1 = vpack.c.bf16 %v2858_v63, %v2857_v0 }
0x108c   :  { %v2861_v2 = vpop.permute.xlu1 %2860 }
0x108d   :  { %v2863_v4 = vunpack.i.h.bf16 %v2861_v2  ;;  %v2862_v5 = vunpack.i.l.bf16 %v2861_v2  ;;  %2741 = vmatprep.subr.msk.bf16.mxu1 %vm3166_vm9, %v2739_v1 }
0x108e   :  { %2744 = vmatpush3.bf16.msk.msra.mxu1 %vm3166_vm9, %v2739_v1 }
0x108f   :  { %v2745_v8 = vpack.c.bf16 %v2863_v4, %v2862_v5 }
0x1091   :  { %2747 = vmatprep.subr.msk.bf16.mxu1 %vm3139_vm4, %v2745_v8 }
0x1092   :  { %v2902_v9 = vpop.eup %2901 }
0x1093   :  { %v1309_v10 = vsel %vm372_vm6, %v2902_v9, 0.0  ;;  %v2904_v11 = vpop.eup %2903 }
0x1094   :  { %1310 = vadd.xlane.f32.xlu1 %v1309_v10  ;;  %v1306_v12 = vsel %vm368_vm5, %v2904_v11, 0.0 }
0x1098   :  { %1307 = vadd.xlane.f32.xlu1 %v1306_v12 }
0x10a9   :  { %1408 = vrot.lane.b32.xlu1 %v1202_v39, %s2958_s14 }
0x1121   :  { %v1311_v13 = vpop.xlane.xlu1 %1310 }
0x1122   :  { %2905 = vrcp.f32 %v1311_v13 }
0x1125   :  { %v1308_v14 = vpop.xlane.xlu1 %1307 }
0x1126   :  { %2907 = vrcp.f32 %v1308_v14  ;;  %v1089_v14 = vld [vmem:[%s3531_s3 + $0x28] sm:$0xff] }
0x1129   :  { %v1409_v18 = vpop.permute.xlu1 %1408 }
0x112c   :  { %v2906_v45 = vpop.eup %2905 }
0x112d   :  { %v1315_v16 = vmul.f32 %v2906_v45, %v2902_v9  ;;  %v1090_v45 = vld [vmem:[%s3531_s3 + $0x30] sm:$0xff] }
0x1130   :  { %v2908_v15 = vpop.eup %2907 }
0x1131   :  { %v1314_v44 = vmul.f32 %v2908_v15, %v2904_v11  ;;  %v1091_v15 = vld [vmem:[%s3531_s3 + $0x38] sm:$0xff] }
0x1133   :  { %2514 = vmatprep.mubr.msk.f32.mxu1 %vm368_vm5, %v1314_v44  ;;  %v2765_v44 = vpack.c.bf16 %v1090_v45, %v1089_v14 }
0x1134   :  { %2515 = vmatmul.mubr.msk.f32.vlgmr.msra.gmra.mrb[18].mxu1 %vm368_vm5, %v1315_v16  ;;  %v1092_v16 = vld [vmem:[%s3531_s3 + $0x40] sm:$0xff] }
0x1135   :  { %2750 = vmatpush3.bf16.xpose.msk.msra.mxu1 %vm3139_vm4, %v2745_v8  ;;  %2521 = vmatprep.mubr.msk.f32.mxu1 %vm284_vm3, %v1407_v17  ;;  %v2769_v17 = vpack.c.bf16 %v1092_v16, %v1091_v15 }
0x113c   :  { %2522 = vmatmul.mubr.msk.f32.vlgmr.msra.gmra.mrb[20].mxu1 %vm284_vm3, %v1409_v18  ;;  %v1067_v18 = vld [vmem:[%s3529_s1 + $0x1c0] sm:$0xff] }
0x1207   :  { %v2516_v19 = vpop.f32.mrb[18].mxu1 }
0x1208   :  { %v1395_v20 = vpop.f32.mrb[19].mxu1 }
0x120f   :  { %v2523_v21 = vpop.f32.mrb[20].mxu1 }
0x1210   :  { %v1494_v22 = vadd.f32 %v2523_v21, %v3156_v27  ;;  %v1488_v24 = vpop.f32.mrb[21].mxu1 }
0x1211   :  { %v1489_v26 = vadd.f32 %v1488_v24, %v3151_v25 }
0x1212   :  { %v1500_v28 = vsel %vm372_vm6, %v1494_v22, -inf }
0x1213   :  { %1501 = vmax.xlane.f32.xlu0 %v1500_v28  ;;  %v1497_v29 = vsel %vm368_vm5, %v1489_v26, -inf }
0x1214   :  { %1498 = vmax.xlane.f32.xlu1 %v1497_v29 }
0x12a0   :  { %v1502_v23 = vpop.xlane.xlu0 %1501 }
0x12a1   :  { %v1504_v30 = vsub.f32 %v1494_v22, %v1502_v23  ;;  %v1499_v31 = vpop.xlane.xlu1 %1498 }
0x12a2   :  { %v1503_v32 = vsub.f32 %v1489_v26, %v1499_v31 }
0x12a3   :  { %v1507_v33 = vmul.f32 1.442695, %v1504_v30 }
0x12a4   :  { %v1505_v34 = vmul.f32 1.442695, %v1503_v32 }
0x12a5   :  { %2909 = vpow2.f32 %v1507_v33  ;;  %v1069_v33 = vld [vmem:[%s3529_s1 + $0x1d0] sm:$0xff] }
0x12a6   :  { %2911 = vpow2.f32 %v1505_v34  ;;  %v1070_v34 = vld [vmem:[%s3529_s1 + $0x1d8] sm:$0xff] }
0x12af   :  { %v2910_v35 = vpop.eup %2909 }
0x12b0   :  { %v1512_v27 = vsel %vm372_vm6, %v2910_v35, 0.0  ;;  %v2912_v36 = vpop.eup %2911 }
0x12b1   :  { %1513 = vadd.xlane.f32.xlu1 %v1512_v27  ;;  %v1509_v25 = vsel %vm368_vm5, %v2912_v36, 0.0  ;;  %v1071_v27 = vld [vmem:[%s3529_s1 + $0x1e0] sm:$0xff] }
0x12b5   :  { %1510 = vadd.xlane.f32.xlu1 %v1509_v25 }
0x12c6   :  { %2865 = vrot.lane.b32.xlu1 %v3329_v42, %s2961_s20 }
0x133e   :  { %v1514_v37 = vpop.xlane.xlu1 %1513 }
0x133f   :  { %2913 = vrcp.f32 %v1514_v37  ;;  %v1073_v37 = vld [vmem:[%s3529_s1 + $0x1f0] sm:$0xff] }
0x1342   :  { %v1511_v38 = vpop.xlane.xlu1 %1510 }
0x1343   :  { %2915 = vrcp.f32 %v1511_v38  ;;  %v1074_v38 = vld [vmem:[%s3529_s1 + $0x1f8] sm:$0xff] }
0x1346   :  { %v2866_v39 = vpop.permute.xlu1 %2865 }
0x1347   :  { %v2868_v46 = vunpack.i.h.bf16 %v2866_v39  ;;  %v2867_v47 = vunpack.i.l.bf16 %v2866_v39  ;;  %v2785_v39 = vpack.c.bf16 %v1074_v38, %v1073_v37 }
0x1349   :  { %v2751_v49 = vpack.c.bf16 %v2868_v46, %v2867_v47  ;;  %v2914_v42 = vpop.eup %2913  ;;  %v1077_v46 = vld [vmem:[%s3529_s1 + $0x210] sm:$0xff]  ;;  %v2789_v47 = vpack.c.bf16 %v1076_v41, %v1075_v40 }
0x134a   :  { %v1518_v48 = vmul.f32 %v2914_v42, %v2910_v35  ;;  %v2777_v35 = vpack.c.bf16 %v1070_v34, %v1069_v33  ;;  %v1079_v42 = vld [vmem:[%s3529_s1 + $0x220] sm:$0xff] }
0x134b   :  { %2753 = vmatprep.subr.msk.bf16.mxu1 %vm3166_vm9, %v2751_v49 }
0x134c   :  { %2756 = vmatpush3.bf16.msk.msra.mxu1 %vm3166_vm9, %v2751_v49  ;;  %v1078_v49 = vld [vmem:[%s3529_s1 + $0x218] sm:$0xff] }
0x134d   :  { %v2916_v51 = vpop.eup %2915  ;;  %2758 = vmatprep.subr.bf16.mxu1 %v2757_v50 }
0x134e   :  { %v1517_v52 = vmul.f32 %v2916_v51, %v2912_v36  ;;  %v1072_v36 = vld [vmem:[%s3529_s1 + $0x1e8] sm:$0xff] }
0x134f   :  { %v2781_v25 = vpack.c.bf16 %v1072_v36, %v1071_v27  ;;  %v1080_v51 = vld [vmem:[%s3529_s1 + $0x228] sm:$0xff] }
0x1350   :  { %2528 = vmatprep.mubr.msk.f32.mxu1 %vm368_vm5, %v1517_v52  ;;  %v2797_v52 = vpack.c.bf16 %v1080_v51, %v1079_v42  ;;  %v25_v42 = vld [vmem:[%s3529_s1 + $0x20] sm:$0x3] }
0x1351   :  { %2529 = vmatmul.mubr.msk.f32.vlgmr.msra.gmra.mrb[22].mxu1 %vm368_vm5, %v1518_v48  ;;  %v1081_v48 = vld [vmem:[%s3529_s1 + $0x230] sm:$0xff] }
0x1352   :  { %2760 = vmatpush3.bf16.msra.mxu1 %v2757_v50  ;;  %v2793_v50 = vpack.c.bf16 %v1078_v49, %v1077_v46  ;;  %v2801_v43 = vpack.c.bf16 %v1082_v54, %v1081_v48  ;;  %v2092_v49 = vld [vmem:[%s3532_s4 + $0x8] sm:$0xff]  ;;  %v2094_v48 = vld [vmem:[%s3532_s4 + $0x18] sm:$0xff] }
0x1353   :  { %2762 = vmatprep.subr.bf16.mxu1 %v2761_v55 }
0x1424   :  { %v2530_v56 = vpop.f32.mrb[22].mxu1 }
0x1425   :  { %v1598_v57 = vpop.f32.mrb[23].mxu1 }
0x1426   :  { %2535 = vmatprep.mubr.msk.f32.mxu1 %vm284_vm3, %v1598_v57 }
0x1427   :  { %2536 = vmatmul.mubr.msk.f32.vlgmr.msra.gmra.mrb[24].mxu1 %vm284_vm3, %v2530_v56 }
0x1428   :  { %2764 = vmatpush3.bf16.msra.mxu1 %v2761_v55  ;;  %2542 = vmatprep.mubr.msk.f32.mxu1 %vm284_vm3, %v1395_v20  ;;  %v2268_v55 = vld [vmem:[%s3531_s3 + $0x48] ss:$0 sm:$0xff] }
0x1429   :  { %2766 = vmatprep.subr.bf16.mxu1 %v2765_v44 }
0x142f   :  { %2543 = vmatmul.mubr.msk.f32.vlgmr.msra.gmra.mrb[24].mxu1 %vm284_vm3, %v2516_v19  ;;  %v1068_v19 = vld [vmem:[%s3529_s1 + $0x1c8] sm:$0xff] }
0x1430   :  { %2768 = vmatpush3.bf16.msra.mxu1 %v2765_v44  ;;  %v2773_v20 = vpack.c.bf16 %v1068_v19, %v1067_v18  ;;  %v2271_v44 = vld [vmem:[%s3529_s1 + $0x240] ss:$0 sm:$0xff] }
0x1431   :  { %2770 = vmatprep.subr.bf16.mxu1 %v2769_v17 }
0x1432   :  { %2774 = vmatprep.subr.bf16.mxu0 %v2773_v20 }
0x1433   :  { %2776 = vmatpush3.bf16.msra.mxu0 %v2773_v20 }
0x1434   :  { %2772 = vmatpush3.bf16.msra.mxu1 %v2769_v17  ;;  %2778 = vmatprep.subr.bf16.mxu0 %v2777_v35 }
0x1435   :  { %2805 = vmatprep.subr.bf16.mxu1 %v2955_v3 }
0x1437   :  { %2780 = vmatpush3.bf16.msra.mxu0 %v2777_v35 }
0x1438   :  { %2782 = vmatprep.subr.bf16.mxu0 %v2781_v25 }
0x143b   :  { %2784 = vmatpush3.bf16.msra.mxu0 %v2781_v25 }
0x143c   :  { %2786 = vmatprep.subr.bf16.mxu0 %v2785_v39 }
0x143f   :  { %2788 = vmatpush3.bf16.msra.mxu0 %v2785_v39 }
0x1440   :  { %2790 = vmatprep.subr.bf16.mxu0 %v2789_v47 }
0x1443   :  { %2792 = vmatpush3.bf16.msra.mxu0 %v2789_v47  ;;  %v2091_v47 = vld [vmem:[%s3532_s4] sm:$0xff] }
0x1444   :  { %2794 = vmatprep.subr.bf16.mxu0 %v2793_v50  ;;  %v2810_v51 = vpack.c.bf16 %v2092_v49, %v2091_v47 }
0x1447   :  { %2796 = vmatpush3.bf16.msra.mxu0 %v2793_v50 }
0x1448   :  { %2798 = vmatprep.subr.bf16.mxu0 %v2797_v52 }
0x144b   :  { %2800 = vmatpush3.bf16.msra.mxu0 %v2797_v52  ;;  %v2093_v52 = vld [vmem:[%s3532_s4 + $0x10] sm:$0xff] }
0x144c   :  { %2802 = vmatprep.subr.bf16.mxu0 %v2801_v43  ;;  %v2813_v53 = vpack.c.bf16 %v2094_v48, %v2093_v52 }
0x144f   :  { %2804 = vmatpush3.bf16.msra.mxu0 %v2801_v43 }
0x1502   :  { %v2544_v58 = vpop.f32.mrb[24].mxu1 }
0x1503   :  { %v1762_v60 = vpop.f32.mrb[25].mxu1  ;;  %v1772_v61 = vadd.f32 %v2544_v58, %v3298_v6 }
0x1504   :  { %v1771_v62 = vadd.f32 %v1762_v60, %v3301_v7 }
0x1505   :  { %v3399_v0 = vadd.f32 %v2267_v59, %v1772_v61 }
0x1506   :  { %v3397_v63 = vadd.f32 %v2267_v59, %v1771_v62 }
0x1507   :  { %v1782_v2 = vsel %vm168_vm2, %v3399_v0, 0.0 }
0x1508   :  { %v1779_v1 = vsel %vm164_vm1, %v3397_v63, 0.0 }
0x1509   :  { %1780 = vadd.xlane.f32.xlu0 %v1779_v1 }
0x150d   :  { %1783 = vadd.xlane.f32.xlu0 %v1782_v2 }
0x1596   :  { %v1781_v4 = vpop.xlane.xlu0 %1780 }
0x1597   :  { %v1785_v5 = vmul.f32 0.03125, %v1781_v4 }
0x1599   :  { %v1787_v8 = vsub.f32 %v3397_v63, %v1785_v5 }
0x159a   :  { %v1784_v9 = vpop.xlane.xlu0 %1783 }
0x159b   :  { %v1786_v6 = vmul.f32 0.03125, %v1784_v9  ;;  %v1789_v10 = vmul.f32 %v1787_v8, %v1787_v8 }
0x159d   :  { %v1788_v7 = vsub.f32 %v3399_v0, %v1786_v6  ;;  %v1791_v11 = vsel %vm164_vm1, %v1789_v10, 0.0 }
0x159e   :  { %1792 = vadd.xlane.f32.xlu0 %v1791_v11 }
0x159f   :  { %v1790_v12 = vmul.f32 %v1788_v7, %v1788_v7 }
0x15a1   :  { %v1794_v13 = vsel %vm168_vm2, %v1790_v12, 0.0 }
0x15a2   :  { %1795 = vadd.xlane.f32.xlu0 %v1794_v13 }
0x162b   :  { %v1793_v21 = vpop.xlane.xlu0 %1792 }
0x162c   :  { %v1797_v22 = vmul.f32 0.03125, %v1793_v21 }
0x162e   :  { %v1799_v24 = vadd.f32 1e-06, %v1797_v22 }
0x162f   :  { %v1796_v26 = vpop.xlane.xlu0 %1795 }
0x1630   :  { %2917 = vrsqrt.f32 %v1799_v24  ;;  %v1798_v28 = vmul.f32 0.03125, %v1796_v26 }
0x1632   :  { %v1800_v29 = vadd.f32 1e-06, %v1798_v28 }
0x1634   :  { %2919 = vrsqrt.f32 %v1800_v29 }
0x163a   :  { %v2918_v23 = vpop.eup %2917 }
0x163b   :  { %v1803_v30 = vmul.f32 %v2918_v23, %v1787_v8 }
0x163d   :  { %2553 = vmatprep.mubr.msk.f32.mxu1 %vm164_vm1, %v1803_v30 }
0x163e   :  { %v2920_v31 = vpop.eup %2919 }
0x163f   :  { %v1804_v32 = vmul.f32 %v2920_v31, %v1788_v7 }
0x1641   :  { %2554 = vmatmul.mubr.msk.f32.vlgmr.msra.gmra.mrb[26].mxu1 %vm164_vm1, %v1804_v32 }
0x1714   :  { %v2555_v56 = vpop.f32.mrb[26].mxu1 }
0x1715   :  { %v1887_v57 = vadd.f32 %v2555_v56, %v2268_v55  ;;  %v1881_v58 = vpop.f32.mrb[27].mxu1 }
0x1716   :  { %v1882_v59 = vadd.f32 %v2268_v55, %v1881_v58 }
0x1717   :  { %v1893_v60 = vmul.f32 0.044715, %v1887_v57  ;;  %v1891_v14 = vmul.f32 0.5, %v1887_v57 }
0x1718   :  { %v1892_v61 = vmul.f32 0.044715, %v1882_v59  ;;  %v1890_v12 = vmul.f32 0.5, %v1882_v59 }
0x1719   :  { %v1895_v62 = vmul.f32 %v1893_v60, %v1887_v57 }
0x171a   :  { %v1894_v1 = vmul.f32 %v1892_v61, %v1882_v59 }
0x171b   :  { %v1897_v2 = vmul.f32 %v1895_v62, %v1887_v57 }
0x171c   :  { %v1896_v4 = vmul.f32 %v1894_v1, %v1882_v59 }
0x171d   :  { %v1899_v5 = vadd.f32 %v1897_v2, %v1887_v57 }
0x171e   :  { %v1898_v8 = vadd.f32 %v1896_v4, %v1882_v59 }
0x171f   :  { %v1901_v9 = vmul.f32 0.7978846, %v1899_v5 }
0x1720   :  { %v1900_v6 = vmul.f32 0.7978846, %v1898_v8 }
0x1721   :  { %2921 = vtanh.f32 %v1901_v9 }
0x1722   :  { %2923 = vtanh.f32 %v1900_v6 }
0x172b   :  { %v2922_v10 = vpop.eup %2921 }
0x172c   :  { %v2924_v7 = vpop.eup %2923  ;;  %v1905_v11 = vadd.f32 1.0, %v2922_v10 }
0x172d   :  { %v1904_v13 = vadd.f32 1.0, %v2924_v7 }
0x172e   :  { %v1907_v15 = vmul.f32 %v1905_v11, %v1891_v14 }
0x172f   :  { %v1906_v45 = vmul.f32 %v1904_v13, %v1890_v12 }
0x1731   :  { %2588 = vmatprep.mubr.f32.mxu0 %v1906_v45  ;;  %v2275_v45 = vld [vmem:[%s3532_s4 + $0x20] ss:$0 sm:$0xff] }
0x1732   :  { %2589 = vmatmul.mubr.f32.vlgmr.msra.gmra.mrb[6].mxu0 %v1907_v15 }
0x1805   :  { %v2590_v16 = vpop.f32.mrb[6].mxu0 }
0x1806   :  { %v1984_v17 = vadd.f32 %v2590_v16, %v2271_v44  ;;  %v1978_v18 = vpop.f32.mrb[7].mxu0 }
0x1807   :  { %v1979_v19 = vadd.f32 %v2271_v44, %v1978_v18  ;;  %v2276_v44 = vld [vmem:[%s3532_s4 + $0x21] ss:$0 sm:$0xff] }
0x1808   :  { %v1988_v20 = vadd.f32 %v1984_v17, %v3399_v0 }
0x1809   :  { %v1987_v21 = vadd.f32 %v1979_v19, %v3397_v63  ;;  %v2963_v63 = vmov 0.0  }
0x180a   :  { %v1992_v22 = vsel %vm168_vm2, %v1988_v20, 0.0  ;;  %2595 = vmatprep.mubr.msk.f32.mxu1 %vm2962_vm10, %v2963_v63 }
0x180b   :  { %1993 = vadd.xlane.f32.xlu0 %v1992_v22  ;;  %v1989_v24 = vsel %vm164_vm1, %v1987_v21, 0.0 }
0x180c   :  { %1990 = vadd.xlane.f32.xlu1 %v1989_v24 }
0x1898   :  { %v1994_v26 = vpop.xlane.xlu0 %1993 }
0x1899   :  { %v1996_v28 = vmul.f32 0.03125, %v1994_v26  ;;  %v1991_v29 = vpop.xlane.xlu1 %1990 }
0x189a   :  { %v1995_v23 = vmul.f32 0.03125, %v1991_v29 }
0x189b   :  { %v1998_v30 = vsub.f32 %v1988_v20, %v1996_v28 }
0x189c   :  { %v1997_v31 = vsub.f32 %v1987_v21, %v1995_v23 }
0x189d   :  { %v2000_v34 = vmul.f32 %v1998_v30, %v1998_v30 }
0x189e   :  { %v1999_v32 = vmul.f32 %v1997_v31, %v1997_v31 }
0x189f   :  { %v2004_v0 = vsel %vm168_vm2, %v2000_v34, 0.0 }
0x18a0   :  { %v2001_v33 = vsel %vm164_vm1, %v1999_v32, 0.0 }
0x18a1   :  { %2002 = vadd.xlane.f32.xlu0 %v2001_v33 }
0x18a5   :  { %2005 = vadd.xlane.f32.xlu0 %v2004_v0 }
0x192e   :  { %v2003_v35 = vpop.xlane.xlu0 %2002 }
0x192f   :  { %v2007_v27 = vmul.f32 0.03125, %v2003_v35 }
0x1931   :  { %v2009_v36 = vadd.f32 1e-06, %v2007_v27 }
0x1932   :  { %v2006_v25 = vpop.xlane.xlu0 %2005 }
0x1933   :  { %v2008_v37 = vmul.f32 0.03125, %v2006_v25  ;;  %2925 = vrsqrt.f32 %v2009_v36 }
0x1935   :  { %v2010_v38 = vadd.f32 1e-06, %v2008_v37 }
0x1937   :  { %2927 = vrsqrt.f32 %v2010_v38 }
0x193d   :  { %v2926_v39 = vpop.eup %2925 }
0x193e   :  { %v2013_v41 = vmul.f32 %v2926_v39, %v1997_v31 }
0x1941   :  { %v2928_v40 = vpop.eup %2927 }
0x1942   :  { %v2014_v46 = vmul.f32 %v2928_v40, %v1998_v30 }
0x1944   :  { %v2806_v50 = vpack.c.bf16 %v2014_v46, %v2013_v41 }
0x1946   :  { %2808 = vmatpush3.bf16.msk.msra.mxu1 %vm3166_vm9, %v2806_v50 }
0x1947   :  { %2809 = vmatprep.subr.bf16.mxu1 %v2955_v3 }
0x1949   :  { %2596 = vmatmul.mubr.msk.f32.vlgmr.msra.gmra.mrb[28].mxu1 %vm368_vm5, %v25_v42 }
0x194a   :  { %2811 = vmatpush3.bf16.msra.mxu1 %v2810_v51  ;;  %2606 = vmatprep.mubr.msk.f32.mxu1 %vm2962_vm10, %v2963_v63 }
0x194b   :  { %2812 = vmatprep.subr.bf16.mxu1 %v2955_v3 }
0x194e   :  { %2814 = vmatpush3.bf16.msra.mxu1 %v2813_v53 }
0x1a1c   :  { %v2087_v54 = vpop.f32.mrb[28].mxu1 }
0x1a1d   :  { %v2597_v43 = vpop.f32.mrb[29].mxu1  ;;  %2607 = vmatmul.mubr.msk.f32.vlgmr.msra.gmra.mrb[30].mxu1 %vm164_vm1, %v2087_v54 }
0x1af0   :  { %v2166_v55 = vpop.f32.mrb[30].mxu1 }
0x1af1   :  { %v2171_v56 = vsel %vm2170_vm11, %v2166_v55, 0.0  ;;  %v2608_v57 = vpop.f32.mrb[31].mxu1 }
0x1af2   :  { %v2172_v58 = vrot.slane %v2171_v56, 4 }
0x1af4   :  { %v2173_v59 = vadd.f32 %v2172_v58, %v2171_v56 }
0x1af6   :  { %v2174_v60 = vrot.slane %v2173_v59, 2 }
0x1af8   :  { %v2175_v61 = vadd.f32 %v2174_v60, %v2173_v59 }
0x1afa   :  { %v2176_v62 = vrot.slane %v2175_v61, 1 }
0x1afc   :  { %v2177_v1 = vadd.f32 %v2176_v62, %v2175_v61 }
0x1afe   :  { %v2179_v2 = vmul.f32 0.5, %v2177_v1 }
0x1b00   :  { %v2180_v4 = vsub.f32 %v2166_v55, %v2179_v2 }
0x1b02   :  { %v2181_v5 = vmul.f32 %v2180_v4, %v2180_v4 }
0x1b04   :  { %v2182_v3 = vsel %vm2170_vm11, %v2181_v5, 0.0 }
0x1b05   :  { %v2183_v8 = vrot.slane %v2182_v3, 4 }
0x1b07   :  { %v2184_v9 = vadd.f32 %v2183_v8, %v2182_v3 }
0x1b09   :  { %v2185_v6 = vrot.slane %v2184_v9, 2 }
0x1b0b   :  { %v2186_v10 = vadd.f32 %v2185_v6, %v2184_v9 }
0x1b0d   :  { %v2187_v7 = vrot.slane %v2186_v10, 1 }
0x1b0f   :  { %v2188_v11 = vadd.f32 %v2187_v7, %v2186_v10 }
0x1b11   :  { %v2189_v12 = vmul.f32 0.5, %v2188_v11 }
0x1b13   :  { %v2190_v13 = vadd.f32 1e-05, %v2189_v12 }
0x1b15   :  { %2929 = vrsqrt.f32 %v2190_v13 }
0x1b1f   :  { %v2930_v14 = vpop.eup %2929 }
0x1b20   :  { %v2192_v15 = vmul.f32 %v2930_v14, %v2180_v4 }
0x1b22   :  { %v2197_v16 = vmul.f32 %v2275_v45, %v2192_v15 }
0x1b24   :  { %v2202_v17 = vadd.f32 %v2276_v44, %v2197_v16 }
0x1b26   :  { %2203 = vst.msk [vmem:[#allocation2] sm:$0x3] %vm2170_vm11, %v2202_v17 }
0x1b27   :  { %2942 = shalt.err (!%p2939_p4)
}
0x1b28   :  { %s2943_s7 = scalar_lea.hbm %s3533_s5, 32 }
0x1b29   :  { %p2944_p5 = scmp.ne.s32.totalorder %s3533_s5, %s2943_s7  ;;  %p2947_p6 = scmp.lt.u32.totalorder %s2943_s7, %s3533_s5 }
0x1b2b   :  { %p2949_p7 = pnand %p2947_p6, %p2944_p5 }
0x1b2d   :  { %2952 = shalt.err (!%p2949_p7)
}
0x1b2e   :  { %2213 = dma.vmem_to_hbm [thread:$0]  %s2211_s28, 32, %s3533_s5, [#allocation3]  }
0x1b2f   :  { %2953 = dma.done.wait [#allocation3], 32  }
0x1b30   :  { %2954 = vsyncadd [#allocation3], 4294967264 }
0x1b31   :  { %2217 = vsyncpa [#allocation3], 1 }

</bundles_post_ra>
